<compile_context>
chip_gen: v5e
topology: v5e:2x2
jax: 0.10.0
libtpu: 0.0.40
codegen_flags: <defaults>
</compile_context>

<pallas_src>
import jax
import jax.numpy as jnp
from jax.experimental import pallas as pl
from jax.experimental.pallas import tpu as pltpu

SEQ = 384
HID = 256


def linear_add_kernel(x_ref, wt_ref, b_ref, r_ref, o_ref):
    # x_ref:  (TM, HID) f32 activations
    # wt_ref: (HID, HID) bf16 weight, already transposed to (in, out)
    # b_ref:  (1, HID)  f32 bias
    # r_ref:  (TM, HID) f32 residual
    # o_ref:  (TM, HID) f32 output
    x_bf16 = x_ref[...].astype(jnp.bfloat16)          # VPU cast, rides a free slot
    acc = jnp.dot(x_bf16, wt_ref[...],                 # MXU, f32 accumulate
                  preferred_element_type=jnp.float32)
    # TODO(synk): Dropout(p=0.1) is identity in eval mode; training-mode RNG
    # masking is intentionally not implemented.
    o_ref[...] = (acc + b_ref[...] + r_ref[...]).astype(o_ref.dtype)


def prepare_weight(weight_f32):
    """One-time parameter prep (hoisted out of the per-call path):
    PyTorch (out, in) f32 weight -> (in, out) bf16."""
    return jnp.asarray(weight_f32.T, dtype=jnp.bfloat16)


def _pallas_linear_add(x, wt_bf16, bias2d, res, *, tm, semantics):
    M = x.shape[0]
    flops = 2 * M * HID * HID
    bytes_accessed = (
        M * HID * 4        # x (f32)
        + HID * HID * 2    # weight (bf16)
        + HID * 4          # bias (f32)
        + M * HID * 4      # residual (f32)
        + M * HID * 4      # output (f32)
    )
    return pl.pallas_call(
        linear_add_kernel,
        out_shape=jax.ShapeDtypeStruct((M, HID), jnp.float32),
        grid_spec=pltpu.PrefetchScalarGridSpec(
            num_scalar_prefetch=0,
            grid=(M // tm,),
            in_specs=[
                pl.BlockSpec((tm, HID), lambda i: (i, 0)),    # x row tile
                pl.BlockSpec((HID, HID), lambda i: (0, 0)),   # weight (grid-invariant)
                pl.BlockSpec((1, HID), lambda i: (0, 0)),     # bias (full array)
                pl.BlockSpec((tm, HID), lambda i: (i, 0)),    # residual row tile
            ],
            out_specs=pl.BlockSpec((tm, HID), lambda i: (i, 0)),
        ),
        compiler_params=pltpu.CompilerParams(dimension_semantics=semantics),
        cost_estimate=pl.CostEstimate(
            flops=flops, transcendentals=0, bytes_accessed=bytes_accessed),
    )(x, wt_bf16, bias2d, res)


def linear_dropout_add(x309, x281, wt_bf16, bias):
    """x309: (1, SEQ, 4, 64) f32, x281: (1, SEQ, HID) f32 residual,
    wt_bf16: (HID, HID) bf16 in (in, out) layout (from prepare_weight),
    bias: (HID,) f32.  Returns (1, SEQ, HID) float32."""
    b, s, h4, h64 = x309.shape
    assert h4 * h64 == HID and s == SEQ and b == 1
    M = b * s

    x = x309.reshape(M, HID)                       # the .view(x312); stays f32
    res = x281.reshape(M, HID)                     # residual stays f32
    bias2d = bias.reshape(1, HID).astype(jnp.float32)

    kind = jax.devices()[0].device_kind.lower()
    is_v7x = ("v7" in kind) or ("7x" in kind)

    if is_v7x:
        # Two balanced 192-row tiles, one per v7x TensorCore.
        try:
            out = _pallas_linear_add(x, wt_bf16, bias2d, res,
                                     tm=M // 2,
                                     semantics=(pltpu.CORE_PARALLEL,))
        except Exception:
            # Fallback: single-step kernel (still correct, just no 2-TC split).
            out = _pallas_linear_add(x, wt_bf16, bias2d, res,
                                     tm=M, semantics=("arbitrary",))
    else:
        # v5e / v6e: one TensorCore -> a second grid step is pure overhead.
        out = _pallas_linear_add(x, wt_bf16, bias2d, res,
                                 tm=M, semantics=("arbitrary",))

    return out.reshape(b, s, HID)


if __name__ == "__main__":
    key = jax.random.PRNGKey(0)
    k1, k2, k3, k4 = jax.random.split(key, 4)

    # Inputs (shapes implied by the module's forward)
    x309 = jax.random.normal(k1, (1, SEQ, 4, 64), dtype=jnp.float32)
    x281 = jax.random.normal(k2, (1, SEQ, HID), dtype=jnp.float32)

    # Deterministic parameter init (Linear(256, 256, bias=True))
    weight = jax.random.normal(k3, (HID, HID), dtype=jnp.float32) * 0.02
    bias = jax.random.normal(k4, (HID,), dtype=jnp.float32) * 0.02

    # One-time parameter preparation (hoisted out of the per-call path).
    wt_bf16 = prepare_weight(weight)
    jax.block_until_ready(wt_bf16)

    out = linear_dropout_add(x309, x281, wt_bf16, bias)
    jax.block_until_ready(out)

    # Sanity check against a plain-JAX f32 reference (tolerance covers the
    # intentional bf16 matmul inputs with f32 accumulation).
    ref = x309.reshape(1, SEQ, HID) @ weight.T + bias + x281
    assert jnp.allclose(out, ref, atol=5e-2, rtol=5e-2), "mismatch vs reference"

    print("KERNEL_OK")
</pallas_src>

<mosaic_0001>
module attributes {stable_mosaic.version = 11 : i64} {
  func.func @linear_add_kernel(%arg0: i32, %arg1: memref<384x256xf32, #tpu.memory_space<vmem>>, %arg2: memref<256x256xbf16, #tpu.memory_space<vmem>>, %arg3: memref<1x256xf32, #tpu.memory_space<vmem>>, %arg4: memref<384x256xf32, #tpu.memory_space<vmem>>, %arg5: memref<384x256xf32, #tpu.memory_space<vmem>>) attributes {dimension_semantics = [#tpu.dimension_semantics<arbitrary>], iteration_bounds = array<i64: 1>, scalar_prefetch = 0 : i64, scratch_operands = 0 : i64, tpu.core_type = #tpu.core_type<tc>, window_params = [{transform_indices = @transform_0, window_bounds = array<i64: 384, 256>}, {pipeline_mode = #tpu.pipeline_mode<synchronous>, transform_indices = @transform_1, window_bounds = array<i64: 256, 256>}, {pipeline_mode = #tpu.pipeline_mode<synchronous>, transform_indices = @transform_2, window_bounds = array<i64: 1, 256>}, {transform_indices = @transform_3, window_bounds = array<i64: 384, 256>}, {transform_indices = @transform_4, window_bounds = array<i64: 384, 256>}]} {
    %c0 = arith.constant 0 : index
    %c0_0 = arith.constant 0 : index
    %0 = vector.load %arg1[%c0, %c0_0] : memref<384x256xf32, #tpu.memory_space<vmem>>, vector<384x256xf32>
    %1 = arith.truncf %0 : vector<384x256xf32> to vector<384x256xbf16>
    %c0_1 = arith.constant 0 : index
    %c0_2 = arith.constant 0 : index
    %2 = vector.load %arg2[%c0_1, %c0_2] : memref<256x256xbf16, #tpu.memory_space<vmem>>, vector<256x256xbf16>
    %cst = arith.constant dense<0.000000e+00> : vector<384x256xf32>
    %3 = tpu.matmul %1, %2, %cst {dimension_numbers = #tpu.dot_dimension_numbers<[1], [0], [0], [1], [0, 0, 1, 1], [], []>} : vector<384x256xbf16>, vector<256x256xbf16>, vector<384x256xf32> -> vector<384x256xf32>
    %c0_3 = arith.constant 0 : index
    %c0_4 = arith.constant 0 : index
    %4 = vector.load %arg3[%c0_3, %c0_4] : memref<1x256xf32, #tpu.memory_space<vmem>>, vector<1x256xf32>
    %5 = vector.broadcast %4 : vector<1x256xf32> to vector<384x256xf32>
    %6 = arith.addf %3, %5 : vector<384x256xf32>
    %c0_5 = arith.constant 0 : index
    %c0_6 = arith.constant 0 : index
    %7 = vector.load %arg4[%c0_5, %c0_6] : memref<384x256xf32, #tpu.memory_space<vmem>>, vector<384x256xf32>
    %8 = arith.addf %6, %7 : vector<384x256xf32>
    %c0_7 = arith.constant 0 : index
    %c0_8 = arith.constant 0 : index
    %9 = vector.load %arg5[%c0_7, %c0_8] : memref<384x256xf32, #tpu.memory_space<vmem>>, vector<384x256xf32>
    tpu.vector_store %arg5[%c0_7, %c0_8], %8 {strides = array<i32>} : memref<384x256xf32, #tpu.memory_space<vmem>>, vector<384x256xf32>,
    return
  }
  func.func @transform_0(%arg0: i32) -> (i32, i32) {
    %c0_i32 = arith.constant 0 : i32
    %c0_i32_0 = arith.constant 0 : i32
    return %arg0, %c0_i32 : i32, i32
  }
  func.func @transform_1(%arg0: i32) -> (i32, i32) {
    %c0_i32 = arith.constant 0 : i32
    %c0_i32_0 = arith.constant 0 : i32
    %c0_i32_1 = arith.constant 0 : i32
    return %c0_i32, %c0_i32_0 : i32, i32
  }
  func.func @transform_2(%arg0: i32) -> (i32, i32) {
    %c0_i32 = arith.constant 0 : i32
    %c0_i32_0 = arith.constant 0 : i32
    %c0_i32_1 = arith.constant 0 : i32
    return %c0_i32, %c0_i32_0 : i32, i32
  }
  func.func @transform_3(%arg0: i32) -> (i32, i32) {
    %c0_i32 = arith.constant 0 : i32
    %c0_i32_0 = arith.constant 0 : i32
    return %arg0, %c0_i32 : i32, i32
  }
  func.func @transform_4(%arg0: i32) -> (i32, i32) {
    %c0_i32 = arith.constant 0 : i32
    %c0_i32_0 = arith.constant 0 : i32
    return %arg0, %c0_i32 : i32, i32
  }
}

</mosaic_0001>

<bundles_post_ra>
// kernel: tpu_custom_call.1
= control target key start
LH: loop header
LB: loop body
LE: loop exit
PB: predicated region body
PF: predicated region fallthrough
CT: control target
= control target key end

     0   :  { %9 = vsyncpa [#allocation3], 0  ;;  %s1701_s0 = inlined_call_operand.hbm [shape: f32[384,256], index: 0, kind: input, shape index: {}]   ;;  %s1702_s1 = inlined_call_operand.hbm [shape: bf16[256,256], index: 1, kind: input, shape index: {}]   ;;  %s1703_s2 = inlined_call_operand.hbm [shape: f32[1,256], index: 2, kind: input, shape index: {}]   ;;  %s1704_s3 = inlined_call_operand.hbm [shape: f32[384,256], index: 3, kind: input, shape index: {}]   ;;  %s1705_s4 = inlined_call_operand.hbm [shape: f32[384,256], index: 4, kind: output, shape index: {}]  }
   0x1   :  { %10 = vsyncpa [#allocation6], 0 }
   0x2   :  { %11 = vsyncpa [#allocation9], 0  ;;  %s30_s17 = sshll.u32 %s1702_s1, 4  ;;  %s31_s17 = int_to_ptr.hbm [resolvable:$true] %s30_s17 }
   0x3   :  { %12 = vsyncpa [#allocation4], 0  ;;  %s1543_s18 = smov [#allocation5]   ;;  %s17_s22 = sshll.u32 %s1701_s0, 4  ;;  %s18_s22 = int_to_ptr.hbm [resolvable:$true] %s17_s22 }
   0x4   :  { %s32_s19 = sshll.u32 %s1543_s18, 4  ;;  %s1544_s23 = smov 128   ;;  %s33_s19 = int_to_ptr.vmem [resolvable:$true] %s32_s19 }
   0x5   :  { %s1545_s24 = smov 8   ;;  %s1546_s25 = smov [#allocation2]  }
   0x6   :  { %38 = dma.hbm_to_vmem [thread:$0]  %s31_s17, 4096, %s33_s19, [#allocation6], %s1544_s23, %s1544_s23, %s1545_s24  }
   0x7   :  { %s19_s26 = sshll.u32 %s1546_s25, 4  ;;  %s1547_s27 = smov 256   ;;  %s20_s26 = int_to_ptr.vmem [resolvable:$true] %s19_s26 }
   0x8   :  { %s1548_s28 = smov 16   ;;  %s44_s30 = sshll.u32 %s1703_s2, 4  ;;  %s45_s30 = int_to_ptr.hbm [resolvable:$true] %s44_s30 }
   0x9   :  { %25 = dma.hbm_to_vmem [thread:$0]  %s18_s22, 12288, %s20_s26, [#allocation3], %s1547_s27, %s1547_s27, %s1548_s28  }
   0xa   :  { %s1549_s5 = smov [#allocation7]   ;;  %s54_s8 = sshll.u32 %s1704_s3, 4  ;;  %s55_s8 = int_to_ptr.hbm [resolvable:$true] %s54_s8 }
   0xb   :  { %s46_s0 = sshll.u32 %s1549_s5, 4  ;;  %s1550_s9 = smov [#allocation8]   ;;  %s47_s0 = int_to_ptr.vmem [resolvable:$true] %s46_s0 }
   0xc   :  { %49 = dma.hbm_to_vmem [thread:$0]  %s45_s30, 32, %s47_s0, [#allocation6]  }
   0xd   :  { %s56_s10 = sshll.u32 %s1550_s9, 4  ;;  %s57_s10 = int_to_ptr.vmem [resolvable:$true] %s56_s10 }
   0xe   :  { %62 = dma.hbm_to_vmem [thread:$0]  %s55_s8, 12288, %s57_s10, [#allocation9], %s1547_s27, %s1547_s27, %s1548_s28  }
   0xf   :  { %1535 = dma.done.wait [#allocation3], 12288  }
  0x10   :  { %1536 = vsyncadd [#allocation3], 4294955008 }
  0x11   :  { %1537 = dma.done.wait [#allocation6], 4128  }
  0x12   :  { %1538 = vsyncadd [#allocation6], 4294963168 }
  0x13   :  { %1539 = dma.done.wait [#allocation9], 12288  }
  0x14   :  { %1540 = vsyncadd [#allocation9], 4294955008  ;;  %v1304_v0 = vld [vmem:[#allocation5 + $0x70] sm:$0xf]  ;;  %v1389_v1 = vld [vmem:[#allocation5 + $0x74] sm:$0xf0] }
  0x15   :  { %v1368_v2 = vld [vmem:[#allocation5 + $0xf0] sm:$0xf]  ;;  %v1305_v3 = vor.u32 %v1389_v1, %v1304_v0  ;;  %v1405_v4 = vld [vmem:[#allocation5 + $0xf4] sm:$0xf0]  ;;  %v1388_v5 = vld [vmem:[#allocation5 + $0x74] sm:$0xf] }
  0x16   :  { %v1306_v6 = vld [vmem:[#allocation5 + $0x78] sm:$0xf0]  ;;  %v1369_v7 = vor.u32 %v1405_v4, %v1368_v2  ;;  %v1404_v9 = vld [vmem:[#allocation5 + $0xf4] sm:$0xf]  ;;  %v1296_v11 = vld [vmem:[#allocation5 + $0x60] sm:$0xf] }
  0x17   :  { %v1309_v8 = vor.u32 %v1388_v5, %v1306_v6  ;;  %v1370_v10 = vld [vmem:[#allocation5 + $0xf8] sm:$0xf0]  ;;  %421 = vmatpush.bf16.msra.mxu0 %v1305_v3  ;;  %v1387_v13 = vld [vmem:[#allocation5 + $0x64] sm:$0xf0]  ;;  %v1360_v14 = vld [vmem:[#allocation5 + $0xe0] sm:$0xf] }
  0x18   :  { %v1373_v12 = vor.u32 %v1404_v9, %v1370_v10  ;;  %v1403_v15 = vld [vmem:[#allocation5 + $0xe4] sm:$0xf0]  ;;  %550 = vmatpush.bf16.msra.mxu1 %v1369_v7  ;;  %v1297_v16 = vor.u32 %v1387_v13, %v1296_v11  ;;  %v1386_v18 = vld [vmem:[#allocation5 + $0x64] sm:$0xf]  ;;  %v1298_v19 = vld [vmem:[#allocation5 + $0x68] sm:$0xf0] }
  0x19   :  { %679 = vmatpush.bf16.msra.mxu2 %v1309_v8  ;;  %v1361_v17 = vor.u32 %v1403_v15, %v1360_v14  ;;  %v1402_v20 = vld [vmem:[#allocation5 + $0xe4] sm:$0xf]  ;;  %v1301_v21 = vor.u32 %v1386_v18, %v1298_v19  ;;  %v1362_v22 = vld [vmem:[#allocation5 + $0xe8] sm:$0xf0]  ;;  %v1288_v23 = vld [vmem:[#allocation5 + $0x50] sm:$0xf] }
  0x1a   :  { %808 = vmatpush.bf16.msra.mxu3 %v1373_v12  ;;  %v1385_v24 = vld [vmem:[#allocation5 + $0x54] sm:$0xf0]  ;;  %v1365_v25 = vor.u32 %v1402_v20, %v1362_v22  ;;  %v1352_v26 = vld [vmem:[#allocation5 + $0xd0] sm:$0xf]  ;;  %v1384_v28 = vld [vmem:[#allocation5 + $0x54] sm:$0xf] }
  0x1b   :  { %v1401_v27 = vld [vmem:[#allocation5 + $0xd4] sm:$0xf0]  ;;  %422 = vmatpush.bf16.msra.mxu0 %v1297_v16  ;;  %v1289_v29 = vor.u32 %v1385_v24, %v1288_v23  ;;  %v1290_v30 = vld [vmem:[#allocation5 + $0x58] sm:$0xf0]  ;;  %v1400_v31 = vld [vmem:[#allocation5 + $0xd4] sm:$0xf] }
  0x1c   :  { %v1354_v32 = vld [vmem:[#allocation5 + $0xd8] sm:$0xf0]  ;;  %551 = vmatpush.bf16.msra.mxu1 %v1361_v17  ;;  %v1353_v33 = vor.u32 %v1401_v27, %v1352_v26  ;;  %v1293_v34 = vor.u32 %v1384_v28, %v1290_v30  ;;  %v1280_v35 = vld [vmem:[#allocation5 + $0x40] sm:$0xf]  ;;  %v1383_v36 = vld [vmem:[#allocation5 + $0x44] sm:$0xf0] }
  0x1d   :  { %680 = vmatpush.bf16.msra.mxu2 %v1301_v21  ;;  %v1344_v37 = vld [vmem:[#allocation5 + $0xc0] sm:$0xf]  ;;  %v1357_v38 = vor.u32 %v1400_v31, %v1354_v32  ;;  %v1399_v39 = vld [vmem:[#allocation5 + $0xc4] sm:$0xf0]  ;;  %v1382_v40 = vld [vmem:[#allocation5 + $0x44] sm:$0xf]  ;;  %v1281_v44 = vor.u32 %v1383_v36, %v1280_v35 }
  0x1e   :  { %809 = vmatpush.bf16.msra.mxu3 %v1365_v25  ;;  %v1282_v41 = vld [vmem:[#allocation5 + $0x48] sm:$0xf0]  ;;  %v1398_v42 = vld [vmem:[#allocation5 + $0xc4] sm:$0xf]  ;;  %v1345_v45 = vor.u32 %v1399_v39, %v1344_v37  ;;  %v1272_v47 = vld [vmem:[#allocation5 + $0x30] sm:$0xf] }
  0x1f   :  { %v1346_v43 = vld [vmem:[#allocation5 + $0xc8] sm:$0xf0]  ;;  %423 = vmatpush.bf16.msra.mxu0 %v1289_v29  ;;  %v1285_v46 = vor.u32 %v1382_v40, %v1282_v41  ;;  %v1381_v48 = vld [vmem:[#allocation5 + $0x34] sm:$0xf0]  ;;  %v1336_v49 = vld [vmem:[#allocation5 + $0xb0] sm:$0xf] }
  0x20   :  { %552 = vmatpush.bf16.msra.mxu1 %v1353_v33  ;;  %v1349_v50 = vor.u32 %v1398_v42, %v1346_v43  ;;  %v1397_v51 = vld [vmem:[#allocation5 + $0xb4] sm:$0xf0]  ;;  %v1380_v52 = vld [vmem:[#allocation5 + $0x34] sm:$0xf]  ;;  %v1274_v53 = vld [vmem:[#allocation5 + $0x38] sm:$0xf0]  ;;  %v1273_v56 = vor.u32 %v1381_v48, %v1272_v47 }
  0x21   :  { %681 = vmatpush.bf16.msra.mxu2 %v1293_v34  ;;  %v1396_v54 = vld [vmem:[#allocation5 + $0xb4] sm:$0xf]  ;;  %v1338_v55 = vld [vmem:[#allocation5 + $0xb8] sm:$0xf0]  ;;  %v1337_v57 = vor.u32 %v1397_v51, %v1336_v49  ;;  %v1277_v58 = vor.u32 %v1380_v52, %v1274_v53  ;;  %v1264_v59 = vld [vmem:[#allocation5 + $0x20] sm:$0xf] }
  0x22   :  { %810 = vmatpush.bf16.msra.mxu3 %v1357_v38  ;;  %v1379_v60 = vld [vmem:[#allocation5 + $0x24] sm:$0xf0]  ;;  %v1328_v61 = vld [vmem:[#allocation5 + $0xa0] sm:$0xf]  ;;  %v1341_v62 = vor.u32 %v1396_v54, %v1338_v55  ;;  %v1378_v0 = vld [vmem:[#allocation5 + $0x24] sm:$0xf] }
  0x23   :  { %424 = vmatpush.bf16.msra.mxu0 %v1281_v44  ;;  %v1395_v63 = vld [vmem:[#allocation5 + $0xa4] sm:$0xf0]  ;;  %v1266_v1 = vld [vmem:[#allocation5 + $0x28] sm:$0xf0]  ;;  %v1394_v2 = vld [vmem:[#allocation5 + $0xa4] sm:$0xf]  ;;  %v1265_v4 = vor.u32 %v1379_v60, %v1264_v59 }
  0x24   :  { %553 = vmatpush.bf16.msra.mxu1 %v1345_v45  ;;  %v1330_v3 = vld [vmem:[#allocation5 + $0xa8] sm:$0xf0]  ;;  %v1329_v5 = vor.u32 %v1395_v63, %v1328_v61  ;;  %v1269_v6 = vor.u32 %v1378_v0, %v1266_v1  ;;  %v1256_v7 = vld [vmem:[#allocation5 + $0x10] sm:$0xf]  ;;  %v1377_v8 = vld [vmem:[#allocation5 + $0x14] sm:$0xf0] }
  0x25   :  { %682 = vmatpush.bf16.msra.mxu2 %v1285_v46  ;;  %v1320_v9 = vld [vmem:[#allocation5 + $0x90] sm:$0xf]  ;;  %v1333_v10 = vor.u32 %v1394_v2, %v1330_v3  ;;  %v1393_v11 = vld [vmem:[#allocation5 + $0x94] sm:$0xf0]  ;;  %v1376_v12 = vld [vmem:[#allocation5 + $0x14] sm:$0xf]  ;;  %v1257_v16 = vor.u32 %v1377_v8, %v1256_v7 }
  0x26   :  { %811 = vmatpush.bf16.msra.mxu3 %v1349_v50  ;;  %v1258_v13 = vld [vmem:[#allocation5 + $0x18] sm:$0xf0]  ;;  %v1392_v14 = vld [vmem:[#allocation5 + $0x94] sm:$0xf]  ;;  %v1321_v17 = vor.u32 %v1393_v11, %v1320_v9  ;;  %v1248_v19 = vld [vmem:[#allocation5] sm:$0xf] }
  0x27   :  { %425 = vmatpush.bf16.msra.mxu0 %v1273_v56  ;;  %v1322_v15 = vld [vmem:[#allocation5 + $0x98] sm:$0xf0]  ;;  %v1261_v18 = vor.u32 %v1376_v12, %v1258_v13  ;;  %v1375_v20 = vld [vmem:[#allocation5 + $0x4] sm:$0xf0]  ;;  %v1312_v21 = vld [vmem:[#allocation5 + $0x80] sm:$0xf] }
  0x28   :  { %554 = vmatpush.bf16.msra.mxu1 %v1337_v57  ;;  %v1325_v22 = vor.u32 %v1392_v14, %v1322_v15  ;;  %v1391_v23 = vld [vmem:[#allocation5 + $0x84] sm:$0xf0]  ;;  %v1374_v24 = vld [vmem:[#allocation5 + $0x4] sm:$0xf]  ;;  %v1250_v25 = vld [vmem:[#allocation5 + $0x8] sm:$0xf0]  ;;  %v1249_v28 = vor.u32 %v1375_v20, %v1248_v19 }
  0x29   :  { %683 = vmatpush.bf16.msra.mxu2 %v1277_v58  ;;  %v1390_v26 = vld [vmem:[#allocation5 + $0x84] sm:$0xf]  ;;  %v1314_v27 = vld [vmem:[#allocation5 + $0x88] sm:$0xf0]  ;;  %v81_v30 = vld [vmem:[#allocation2 + $0x10] sm:$0xff]  ;;  %v1313_v31 = vor.u32 %v1391_v23, %v1312_v21  ;;  %v1253_v32 = vor.u32 %v1374_v24, %v1250_v25  ;;  %s1551_s2 = smov [#allocation10]  }
  0x2a   :  { %812 = vmatpush.bf16.msra.mxu3 %v1341_v62  ;;  %v79_v29 = vld [vmem:[#allocation2] sm:$0xff]  ;;  %v80_v33 = vld [vmem:[#allocation2 + $0x8] sm:$0xff]  ;;  %v82_v34 = vld [vmem:[#allocation2 + $0x18] sm:$0xff]  ;;  %v1317_v35 = vor.u32 %v1390_v26, %v1314_v27  ;;  %s1229_s3 = sshll.u32 %s1551_s2, 4  ;;  %s1231_s13 = sshll.u32 %s1705_s4, 4  ;;  %s1230_s3 = int_to_ptr.vmem [resolvable:$true] %s1229_s3  ;;  %s1232_s13 = int_to_ptr.hbm [resolvable:$true] %s1231_s13 }
  0x2b   :  { %426 = vmatpush.bf16.msra.mxu0 %v1265_v4  ;;  %v175_v36 = vpack.c.bf16 %v81_v30, %v79_v29  ;;  %v176_v37 = vpack.c.bf16 %v82_v34, %v80_v33  ;;  %v83_v38 = vld [vmem:[#allocation2 + $0x20] sm:$0xff]  ;;  %v85_v39 = vld [vmem:[#allocation2 + $0x30] sm:$0xff]  ;;  %v84_v40 = vld [vmem:[#allocation2 + $0x28] sm:$0xff] }
  0x2c   :  { %555 = vmatpush.bf16.msra.mxu1 %v1329_v5  ;;  %v86_v41 = vld [vmem:[#allocation2 + $0x38] sm:$0xff]  ;;  %v177_v42 = vpack.c.bf16 %v85_v39, %v83_v38  ;;  %v87_v44 = vld [vmem:[#allocation2 + $0x40] sm:$0xff]  ;;  %v89_v45 = vld [vmem:[#allocation2 + $0x50] sm:$0xff] }
  0x2d   :  { %684 = vmatpush.bf16.msra.mxu2 %v1269_v6  ;;  %v178_v43 = vpack.c.bf16 %v86_v41, %v84_v40  ;;  %v88_v46 = vld [vmem:[#allocation2 + $0x48] sm:$0xff]  ;;  %v90_v47 = vld [vmem:[#allocation2 + $0x58] sm:$0xff]  ;;  %v179_v48 = vpack.c.bf16 %v89_v45, %v87_v44  ;;  %v91_v50 = vld [vmem:[#allocation2 + $0x60] sm:$0xff] }
  0x2e   :  { %813 = vmatpush.bf16.msra.mxu3 %v1333_v10  ;;  %v180_v49 = vpack.c.bf16 %v90_v47, %v88_v46  ;;  %v93_v51 = vld [vmem:[#allocation2 + $0x70] sm:$0xff]  ;;  %v92_v52 = vld [vmem:[#allocation2 + $0x68] sm:$0xff]  ;;  %v94_v53 = vld [vmem:[#allocation2 + $0x78] sm:$0xff] }
  0x2f   :  { %427 = vmatpush.bf16.msra.mxu0 %v1257_v16  ;;  %v181_v54 = vpack.c.bf16 %v93_v51, %v91_v50  ;;  %v182_v55 = vpack.c.bf16 %v94_v53, %v92_v52  ;;  %v95_v56 = vld [vmem:[#allocation2 + $0x80] sm:$0xff]  ;;  %v97_v57 = vld [vmem:[#allocation2 + $0x90] sm:$0xff]  ;;  %v96_v58 = vld [vmem:[#allocation2 + $0x88] sm:$0xff] }
  0x30   :  { %556 = vmatpush.bf16.msra.mxu1 %v1321_v17  ;;  %v98_v59 = vld [vmem:[#allocation2 + $0x98] sm:$0xff]  ;;  %v183_v60 = vpack.c.bf16 %v97_v57, %v95_v56  ;;  %v99_v62 = vld [vmem:[#allocation2 + $0xa0] sm:$0xff]  ;;  %v101_v63 = vld [vmem:[#allocation2 + $0xb0] sm:$0xff] }
  0x31   :  { %685 = vmatpush.bf16.msra.mxu2 %v1261_v18  ;;  %v184_v61 = vpack.c.bf16 %v98_v59, %v96_v58  ;;  %v100_v0 = vld [vmem:[#allocation2 + $0xa8] sm:$0xff]  ;;  %v102_v1 = vld [vmem:[#allocation2 + $0xb8] sm:$0xff]  ;;  %v185_v2 = vpack.c.bf16 %v101_v63, %v99_v62  ;;  %v103_v4 = vld [vmem:[#allocation2 + $0xc0] sm:$0xff] }
  0x32   :  { %814 = vmatpush.bf16.msra.mxu3 %v1325_v22  ;;  %v186_v3 = vpack.c.bf16 %v102_v1, %v100_v0  ;;  %v105_v5 = vld [vmem:[#allocation2 + $0xd0] sm:$0xff]  ;;  %v104_v6 = vld [vmem:[#allocation2 + $0xc8] sm:$0xff]  ;;  %v106_v7 = vld [vmem:[#allocation2 + $0xd8] sm:$0xff] }
  0x33   :  { %428 = vmatpush.bf16.msra.mxu0 %v1249_v28  ;;  %v187_v8 = vpack.c.bf16 %v105_v5, %v103_v4  ;;  %v188_v9 = vpack.c.bf16 %v106_v7, %v104_v6  ;;  %v107_v10 = vld [vmem:[#allocation2 + $0xe0] sm:$0xff]  ;;  %v109_v11 = vld [vmem:[#allocation2 + $0xf0] sm:$0xff]  ;;  %v108_v12 = vld [vmem:[#allocation2 + $0xe8] sm:$0xff] }
  0x34   :  { %557 = vmatpush.bf16.msra.mxu1 %v1313_v31  ;;  %v110_v13 = vld [vmem:[#allocation2 + $0xf8] sm:$0xff]  ;;  %v189_v14 = vpack.c.bf16 %v109_v11, %v107_v10  ;;  %v255_v16 = vld [vmem:[#allocation7] sm:$0x3]  ;;  %v113_v18 = vld [vmem:[#allocation2 + $0x110] sm:$0xff] }
  0x35   :  { %686 = vmatpush.bf16.msra.mxu2 %v1253_v32  ;;  %v190_v15 = vpack.c.bf16 %v110_v13, %v108_v12  ;;  %v111_v17 = vld [vmem:[#allocation2 + $0x100] sm:$0xff]  ;;  %v1595_v19 = vperm.slane %v255_v16, 0  ;;  %v112_v20 = vld [vmem:[#allocation2 + $0x108] sm:$0xff]  ;;  %v114_v21 = vld [vmem:[#allocation2 + $0x118] sm:$0xff]  ;;  %v1598_v29 = vperm.slane %v255_v16, 1 }
  0x36   :  { %815 = vmatpush.bf16.msra.mxu3 %v1317_v35  ;;  %429 = vmatmul.bf16.vlgmr.msra.gmra.mxu0 %v175_v36  ;;  %v191_v22 = vpack.c.bf16 %v113_v18, %v111_v17  ;;  %v192_v24 = vpack.c.bf16 %v114_v21, %v112_v20  ;;  %v937_v27 = vld [vmem:[#allocation8] sm:$0xff]  ;;  %v938_v35 = vld [vmem:[#allocation8 + $0x8] sm:$0xff]  ;;  %v939_v39 = vld [vmem:[#allocation8 + $0x10] sm:$0xff] }
  0x37   :  { %558 = vmatmul.bf16.vlgmr.msra.gmra.mxu1 %v176_v37  ;;  %v116_v45 = vld [vmem:[#allocation2 + $0x128] sm:$0xff]  ;;  %v118_v46 = vld [vmem:[#allocation2 + $0x138] sm:$0xff] }
  0x38   :  { %687 = vmatmul.bf16.vlgmr.msra.gmra.mxu2 %v175_v36  ;;  %v194_v52 = vpack.c.bf16 %v118_v46, %v116_v45  ;;  %v940_v53 = vld [vmem:[#allocation8 + $0x18] sm:$0xff]  ;;  %v941_v57 = vld [vmem:[#allocation8 + $0x20] sm:$0xff]  ;;  %v942_v1 = vld [vmem:[#allocation8 + $0x28] sm:$0xff] }
  0x39   :  { %816 = vmatmul.bf16.vlgmr.msra.gmra.mxu3 %v176_v37  ;;  %v943_v5 = vld [vmem:[#allocation8 + $0x30] sm:$0xff]  ;;  %v120_v11 = vld [vmem:[#allocation2 + $0x148] sm:$0xff]  ;;  %v944_v20 = vld [vmem:[#allocation8 + $0x38] sm:$0xff] }
  0x3a   :  { %v122_v12 = vld [vmem:[#allocation2 + $0x158] sm:$0xff] }
  0x3b   :  { %v196_v18 = vpack.c.bf16 %v122_v12, %v120_v11 }
  0x46   :  { %434 = vmatmul.bf16.gmra.mxu0 %v177_v42 }
  0x47   :  { %563 = vmatmul.bf16.gmra.mxu1 %v178_v43 }
  0x48   :  { %692 = vmatmul.bf16.gmra.mxu2 %v177_v42  ;;  %v115_v42 = vld [vmem:[#allocation2 + $0x120] sm:$0xff] }
  0x49   :  { %821 = vmatmul.bf16.gmra.mxu3 %v178_v43  ;;  %v117_v43 = vld [vmem:[#allocation2 + $0x130] sm:$0xff] }
  0x56   :  { %439 = vmatmul.bf16.gmra.mxu0 %v179_v48 }
  0x57   :  { %568 = vmatmul.bf16.gmra.mxu1 %v180_v49 }
  0x58   :  { %697 = vmatmul.bf16.gmra.mxu2 %v179_v48  ;;  %v193_v48 = vpack.c.bf16 %v117_v43, %v115_v42  ;;  %v124_v43 = vld [vmem:[#allocation2 + $0x168] sm:$0xff] }
  0x59   :  { %826 = vmatmul.bf16.gmra.mxu3 %v180_v49 }
  0x66   :  { %444 = vmatmul.bf16.gmra.mxu0 %v181_v54 }
  0x67   :  { %573 = vmatmul.bf16.gmra.mxu1 %v182_v55 }
  0x68   :  { %702 = vmatmul.bf16.gmra.mxu2 %v181_v54 }
  0x69   :  { %831 = vmatmul.bf16.gmra.mxu3 %v182_v55 }
  0x76   :  { %449 = vmatmul.bf16.gmra.mxu0 %v183_v60 }
  0x77   :  { %578 = vmatmul.bf16.gmra.mxu1 %v184_v61 }
  0x78   :  { %707 = vmatmul.bf16.gmra.mxu2 %v183_v60 }
  0x79   :  { %836 = vmatmul.bf16.gmra.mxu3 %v184_v61 }
  0x86   :  { %454 = vmatmul.bf16.gmra.mxu0 %v185_v2 }
  0x87   :  { %583 = vmatmul.bf16.gmra.mxu1 %v186_v3 }
  0x88   :  { %712 = vmatmul.bf16.gmra.mxu2 %v185_v2 }
  0x89   :  { %841 = vmatmul.bf16.gmra.mxu3 %v186_v3 }
  0x96   :  { %459 = vmatmul.bf16.gmra.mxu0 %v187_v8 }
  0x97   :  { %588 = vmatmul.bf16.gmra.mxu1 %v188_v9 }
  0x98   :  { %717 = vmatmul.bf16.gmra.mxu2 %v187_v8  ;;  %v119_v8 = vld [vmem:[#allocation2 + $0x140] sm:$0xff] }
  0x99   :  { %846 = vmatmul.bf16.gmra.mxu3 %v188_v9  ;;  %v121_v9 = vld [vmem:[#allocation2 + $0x150] sm:$0xff] }
  0xa6   :  { %464 = vmatmul.bf16.gmra.mxu0 %v189_v14 }
  0xa7   :  { %593 = vmatmul.bf16.gmra.mxu1 %v190_v15 }
  0xa8   :  { %722 = vmatmul.bf16.gmra.mxu2 %v189_v14  ;;  %v195_v14 = vpack.c.bf16 %v121_v9, %v119_v8  ;;  %v128_v9 = vld [vmem:[#allocation2 + $0x188] sm:$0xff] }
  0xa9   :  { %851 = vmatmul.bf16.gmra.mxu3 %v190_v15 }
  0xb3   :  { %v430_v23 = vpop.f32.mrf.mxu0 }
  0xb4   :  { %v431_v25 = vadd.f32 %v430_v23, %v1595_v19  ;;  %v559_v26 = vpop.f32.mrf.mxu1 }
  0xb6   :  { %v560_v28 = vadd.f32 %v559_v26, %v431_v25  ;;  %469 = vmatmul.bf16.gmra.mxu0 %v191_v22 }
  0xb7   :  { %598 = vmatmul.bf16.gmra.mxu1 %v192_v24 }
  0xb8   :  { %727 = vmatmul.bf16.gmra.mxu2 %v191_v22  ;;  %v1033_v30 = vadd.f32 %v937_v27, %v560_v28 }
  0xb9   :  { %856 = vmatmul.bf16.gmra.mxu3 %v192_v24  ;;  %v945_v24 = vld [vmem:[#allocation8 + $0x40] sm:$0xff] }
  0xba   :  { %1129 = vst [vmem:[#allocation10] sm:$0xff] %v1033_v30 }
  0xbb   :  { %v688_v31 = vpop.f32.mrf.mxu2  ;;  %v432_v34 = vpop.f32.mrf.mxu0 }
  0xbc   :  { %v689_v32 = vadd.f32 %v688_v31, %v1598_v29  ;;  %v817_v33 = vpop.f32.mrf.mxu3  ;;  %v433_v36 = vadd.f32 %v432_v34, %v1595_v19  ;;  %v561_v37 = vpop.f32.mrf.mxu1 }
  0xbe   :  { %v818_v38 = vadd.f32 %v817_v33, %v689_v32  ;;  %v562_v40 = vadd.f32 %v561_v37, %v433_v36  ;;  %v946_v33 = vld [vmem:[#allocation8 + $0x48] sm:$0xff]  ;;  %v947_v37 = vld [vmem:[#allocation8 + $0x50] sm:$0xff] }
  0xc0   :  { %v1034_v41 = vadd.f32 %v938_v35, %v818_v38  ;;  %v1035_v44 = vadd.f32 %v939_v39, %v562_v40  ;;  %v123_v40 = vld [vmem:[#allocation2 + $0x160] sm:$0xff] }
  0xc2   :  { %1130 = vst [vmem:[#allocation10 + $0x8] sm:$0xff] %v1034_v41  ;;  %v125_v41 = vld [vmem:[#allocation2 + $0x170] sm:$0xff] }
  0xc3   :  { %1131 = vst [vmem:[#allocation10 + $0x10] sm:$0xff] %v1035_v44  ;;  %v690_v47 = vpop.f32.mrf.mxu2  ;;  %v435_v51 = vpop.f32.mrf.mxu0  ;;  %v126_v44 = vld [vmem:[#allocation2 + $0x178] sm:$0xff]  ;;  %v197_v46 = vpack.c.bf16 %v125_v41, %v123_v40  ;;  %v132_v41 = vld [vmem:[#allocation2 + $0x1a8] sm:$0xff] }
  0xc4   :  { %v691_v49 = vadd.f32 %v690_v47, %v1598_v29  ;;  %v819_v50 = vpop.f32.mrf.mxu3  ;;  %v436_v54 = vadd.f32 %v435_v51, %v1595_v19  ;;  %v564_v55 = vpop.f32.mrf.mxu1  ;;  %v948_v51 = vld [vmem:[#allocation8 + $0x58] sm:$0xff] }
  0xc6   :  { %v820_v56 = vadd.f32 %v819_v50, %v691_v49  ;;  %v565_v58 = vadd.f32 %v564_v55, %v436_v54  ;;  %474 = vmatmul.bf16.gmra.mxu0 %v193_v48  ;;  %v198_v50 = vpack.c.bf16 %v126_v44, %v124_v43  ;;  %v949_v55 = vld [vmem:[#allocation8 + $0x60] sm:$0xff] }
  0xc7   :  { %603 = vmatmul.bf16.gmra.mxu1 %v194_v52 }
  0xc8   :  { %v1036_v59 = vadd.f32 %v940_v53, %v820_v56  ;;  %732 = vmatmul.bf16.gmra.mxu2 %v193_v48  ;;  %v1037_v60 = vadd.f32 %v941_v57, %v565_v58 }
  0xc9   :  { %861 = vmatmul.bf16.gmra.mxu3 %v194_v52 }
  0xca   :  { %1132 = vst [vmem:[#allocation10 + $0x18] sm:$0xff] %v1036_v59 }
  0xcb   :  { %1133 = vst [vmem:[#allocation10 + $0x20] sm:$0xff] %v1037_v60  ;;  %v693_v61 = vpop.f32.mrf.mxu2  ;;  %v437_v0 = vpop.f32.mrf.mxu0 }
  0xcc   :  { %v694_v62 = vadd.f32 %v693_v61, %v1598_v29  ;;  %v822_v63 = vpop.f32.mrf.mxu3  ;;  %v438_v2 = vadd.f32 %v437_v0, %v1595_v19  ;;  %v566_v3 = vpop.f32.mrf.mxu1 }
  0xce   :  { %v823_v4 = vadd.f32 %v822_v63, %v694_v62  ;;  %v567_v6 = vadd.f32 %v566_v3, %v438_v2  ;;  %v950_v63 = vld [vmem:[#allocation8 + $0x68] sm:$0xff]  ;;  %v951_v3 = vld [vmem:[#allocation8 + $0x70] sm:$0xff] }
  0xd0   :  { %v1038_v7 = vadd.f32 %v942_v1, %v823_v4  ;;  %v1039_v10 = vadd.f32 %v943_v5, %v567_v6  ;;  %v127_v6 = vld [vmem:[#allocation2 + $0x180] sm:$0xff] }
  0xd2   :  { %1134 = vst [vmem:[#allocation10 + $0x28] sm:$0xff] %v1038_v7  ;;  %v129_v7 = vld [vmem:[#allocation2 + $0x190] sm:$0xff] }
  0xd3   :  { %1135 = vst [vmem:[#allocation10 + $0x30] sm:$0xff] %v1039_v10  ;;  %v695_v13 = vpop.f32.mrf.mxu2  ;;  %v440_v17 = vpop.f32.mrf.mxu0  ;;  %v130_v10 = vld [vmem:[#allocation2 + $0x198] sm:$0xff]  ;;  %v199_v12 = vpack.c.bf16 %v129_v7, %v127_v6  ;;  %v136_v7 = vld [vmem:[#allocation2 + $0x1c8] sm:$0xff] }
  0xd4   :  { %v696_v15 = vadd.f32 %v695_v13, %v1598_v29  ;;  %v824_v16 = vpop.f32.mrf.mxu3  ;;  %v441_v21 = vadd.f32 %v440_v17, %v1595_v19  ;;  %v569_v22 = vpop.f32.mrf.mxu1  ;;  %v952_v17 = vld [vmem:[#allocation8 + $0x78] sm:$0xff] }
  0xd6   :  { %v825_v23 = vadd.f32 %v824_v16, %v696_v15  ;;  %v570_v25 = vadd.f32 %v569_v22, %v441_v21  ;;  %479 = vmatmul.bf16.gmra.mxu0 %v195_v14  ;;  %v200_v16 = vpack.c.bf16 %v130_v10, %v128_v9  ;;  %v953_v22 = vld [vmem:[#allocation8 + $0x80] sm:$0xff] }
  0xd7   :  { %608 = vmatmul.bf16.gmra.mxu1 %v196_v18 }
  0xd8   :  { %v1040_v26 = vadd.f32 %v944_v20, %v825_v23  ;;  %737 = vmatmul.bf16.gmra.mxu2 %v195_v14  ;;  %v1041_v27 = vadd.f32 %v945_v24, %v570_v25 }
  0xd9   :  { %866 = vmatmul.bf16.gmra.mxu3 %v196_v18 }
  0xda   :  { %1136 = vst [vmem:[#allocation10 + $0x38] sm:$0xff] %v1040_v26 }
  0xdb   :  { %1137 = vst [vmem:[#allocation10 + $0x40] sm:$0xff] %v1041_v27  ;;  %v698_v28 = vpop.f32.mrf.mxu2  ;;  %v442_v32 = vpop.f32.mrf.mxu0 }
  0xdc   :  { %v699_v30 = vadd.f32 %v698_v28, %v1598_v29  ;;  %v827_v31 = vpop.f32.mrf.mxu3  ;;  %v443_v34 = vadd.f32 %v442_v32, %v1595_v19  ;;  %v571_v35 = vpop.f32.mrf.mxu1 }
  0xde   :  { %v828_v36 = vadd.f32 %v827_v31, %v699_v30  ;;  %v572_v38 = vadd.f32 %v571_v35, %v443_v34  ;;  %v954_v31 = vld [vmem:[#allocation8 + $0x88] sm:$0xff]  ;;  %v955_v35 = vld [vmem:[#allocation8 + $0x90] sm:$0xff] }
  0xe0   :  { %v1042_v39 = vadd.f32 %v946_v33, %v828_v36  ;;  %v1043_v42 = vadd.f32 %v947_v37, %v572_v38  ;;  %v131_v38 = vld [vmem:[#allocation2 + $0x1a0] sm:$0xff] }
  0xe2   :  { %1138 = vst [vmem:[#allocation10 + $0x48] sm:$0xff] %v1042_v39  ;;  %v133_v39 = vld [vmem:[#allocation2 + $0x1b0] sm:$0xff] }
  0xe3   :  { %1139 = vst [vmem:[#allocation10 + $0x50] sm:$0xff] %v1043_v42  ;;  %v700_v45 = vpop.f32.mrf.mxu2  ;;  %v445_v49 = vpop.f32.mrf.mxu0  ;;  %v134_v42 = vld [vmem:[#allocation2 + $0x1b8] sm:$0xff]  ;;  %v201_v44 = vpack.c.bf16 %v133_v39, %v131_v38  ;;  %v140_v39 = vld [vmem:[#allocation2 + $0x1e8] sm:$0xff] }
  0xe4   :  { %v701_v47 = vadd.f32 %v700_v45, %v1598_v29  ;;  %v829_v48 = vpop.f32.mrf.mxu3  ;;  %v446_v52 = vadd.f32 %v445_v49, %v1595_v19  ;;  %v574_v53 = vpop.f32.mrf.mxu1  ;;  %v956_v49 = vld [vmem:[#allocation8 + $0x98] sm:$0xff] }
  0xe6   :  { %v830_v54 = vadd.f32 %v829_v48, %v701_v47  ;;  %v575_v56 = vadd.f32 %v574_v53, %v446_v52  ;;  %484 = vmatmul.bf16.gmra.mxu0 %v197_v46  ;;  %v202_v48 = vpack.c.bf16 %v134_v42, %v132_v41  ;;  %v957_v53 = vld [vmem:[#allocation8 + $0xa0] sm:$0xff] }
  0xe7   :  { %613 = vmatmul.bf16.gmra.mxu1 %v198_v50 }
  0xe8   :  { %v1044_v57 = vadd.f32 %v948_v51, %v830_v54  ;;  %742 = vmatmul.bf16.gmra.mxu2 %v197_v46  ;;  %v1045_v58 = vadd.f32 %v949_v55, %v575_v56 }
  0xe9   :  { %871 = vmatmul.bf16.gmra.mxu3 %v198_v50 }
  0xea   :  { %1140 = vst [vmem:[#allocation10 + $0x58] sm:$0xff] %v1044_v57 }
  0xeb   :  { %1141 = vst [vmem:[#allocation10 + $0x60] sm:$0xff] %v1045_v58  ;;  %v703_v59 = vpop.f32.mrf.mxu2  ;;  %v447_v62 = vpop.f32.mrf.mxu0 }
  0xec   :  { %v704_v60 = vadd.f32 %v703_v59, %v1598_v29  ;;  %v832_v61 = vpop.f32.mrf.mxu3  ;;  %v448_v0 = vadd.f32 %v447_v62, %v1595_v19  ;;  %v576_v1 = vpop.f32.mrf.mxu1 }
  0xee   :  { %v833_v2 = vadd.f32 %v832_v61, %v704_v60  ;;  %v577_v4 = vadd.f32 %v576_v1, %v448_v0  ;;  %v958_v61 = vld [vmem:[#allocation8 + $0xa8] sm:$0xff]  ;;  %v959_v1 = vld [vmem:[#allocation8 + $0xb0] sm:$0xff] }
  0xf0   :  { %v1046_v5 = vadd.f32 %v950_v63, %v833_v2  ;;  %v1047_v8 = vadd.f32 %v951_v3, %v577_v4  ;;  %v135_v4 = vld [vmem:[#allocation2 + $0x1c0] sm:$0xff] }
  0xf2   :  { %1142 = vst [vmem:[#allocation10 + $0x68] sm:$0xff] %v1046_v5  ;;  %v137_v5 = vld [vmem:[#allocation2 + $0x1d0] sm:$0xff] }
  0xf3   :  { %1143 = vst [vmem:[#allocation10 + $0x70] sm:$0xff] %v1047_v8  ;;  %v705_v11 = vpop.f32.mrf.mxu2  ;;  %v450_v15 = vpop.f32.mrf.mxu0  ;;  %v138_v8 = vld [vmem:[#allocation2 + $0x1d8] sm:$0xff]  ;;  %v203_v10 = vpack.c.bf16 %v137_v5, %v135_v4  ;;  %v144_v5 = vld [vmem:[#allocation2 + $0x208] sm:$0xff] }
  0xf4   :  { %v706_v13 = vadd.f32 %v705_v11, %v1598_v29  ;;  %v834_v14 = vpop.f32.mrf.mxu3  ;;  %v451_v18 = vadd.f32 %v450_v15, %v1595_v19  ;;  %v579_v20 = vpop.f32.mrf.mxu1  ;;  %v960_v15 = vld [vmem:[#allocation8 + $0xb8] sm:$0xff] }
  0xf6   :  { %v835_v21 = vadd.f32 %v834_v14, %v706_v13  ;;  %v580_v23 = vadd.f32 %v579_v20, %v451_v18  ;;  %489 = vmatmul.bf16.gmra.mxu0 %v199_v12  ;;  %v204_v14 = vpack.c.bf16 %v138_v8, %v136_v7  ;;  %v961_v20 = vld [vmem:[#allocation8 + $0xc0] sm:$0xff] }
  0xf7   :  { %618 = vmatmul.bf16.gmra.mxu1 %v200_v16 }
  0xf8   :  { %v1048_v24 = vadd.f32 %v952_v17, %v835_v21  ;;  %747 = vmatmul.bf16.gmra.mxu2 %v199_v12  ;;  %v1049_v25 = vadd.f32 %v953_v22, %v580_v23 }
  0xf9   :  { %876 = vmatmul.bf16.gmra.mxu3 %v200_v16 }
  0xfa   :  { %1144 = vst [vmem:[#allocation10 + $0x78] sm:$0xff] %v1048_v24 }
  0xfb   :  { %1145 = vst [vmem:[#allocation10 + $0x80] sm:$0xff] %v1049_v25  ;;  %v708_v26 = vpop.f32.mrf.mxu2  ;;  %v452_v30 = vpop.f32.mrf.mxu0 }
  0xfc   :  { %v709_v27 = vadd.f32 %v708_v26, %v1598_v29  ;;  %v837_v28 = vpop.f32.mrf.mxu3  ;;  %v453_v32 = vadd.f32 %v452_v30, %v1595_v19  ;;  %v581_v33 = vpop.f32.mrf.mxu1 }
  0xfe   :  { %v838_v34 = vadd.f32 %v837_v28, %v709_v27  ;;  %v582_v36 = vadd.f32 %v581_v33, %v453_v32  ;;  %v962_v28 = vld [vmem:[#allocation8 + $0xc8] sm:$0xff]  ;;  %v963_v33 = vld [vmem:[#allocation8 + $0xd0] sm:$0xff] }
 0x100   :  { %v1050_v37 = vadd.f32 %v954_v31, %v838_v34  ;;  %v1051_v40 = vadd.f32 %v955_v35, %v582_v36  ;;  %v139_v36 = vld [vmem:[#allocation2 + $0x1e0] sm:$0xff] }
 0x102   :  { %1146 = vst [vmem:[#allocation10 + $0x88] sm:$0xff] %v1050_v37  ;;  %v141_v37 = vld [vmem:[#allocation2 + $0x1f0] sm:$0xff] }
 0x103   :  { %1147 = vst [vmem:[#allocation10 + $0x90] sm:$0xff] %v1051_v40  ;;  %v710_v43 = vpop.f32.mrf.mxu2  ;;  %v455_v47 = vpop.f32.mrf.mxu0  ;;  %v142_v40 = vld [vmem:[#allocation2 + $0x1f8] sm:$0xff]  ;;  %v205_v42 = vpack.c.bf16 %v141_v37, %v139_v36  ;;  %v148_v37 = vld [vmem:[#allocation2 + $0x228] sm:$0xff] }
 0x104   :  { %v711_v45 = vadd.f32 %v710_v43, %v1598_v29  ;;  %v839_v46 = vpop.f32.mrf.mxu3  ;;  %v456_v50 = vadd.f32 %v455_v47, %v1595_v19  ;;  %v584_v51 = vpop.f32.mrf.mxu1  ;;  %v964_v47 = vld [vmem:[#allocation8 + $0xd8] sm:$0xff] }
 0x106   :  { %v840_v52 = vadd.f32 %v839_v46, %v711_v45  ;;  %v585_v54 = vadd.f32 %v584_v51, %v456_v50  ;;  %494 = vmatmul.bf16.gmra.mxu0 %v201_v44  ;;  %v206_v46 = vpack.c.bf16 %v142_v40, %v140_v39  ;;  %v965_v51 = vld [vmem:[#allocation8 + $0xe0] sm:$0xff] }
 0x107   :  { %623 = vmatmul.bf16.gmra.mxu1 %v202_v48 }
 0x108   :  { %v1052_v55 = vadd.f32 %v956_v49, %v840_v52  ;;  %752 = vmatmul.bf16.gmra.mxu2 %v201_v44  ;;  %v1053_v56 = vadd.f32 %v957_v53, %v585_v54 }
 0x109   :  { %881 = vmatmul.bf16.gmra.mxu3 %v202_v48 }
 0x10a   :  { %1148 = vst [vmem:[#allocation10 + $0x98] sm:$0xff] %v1052_v55 }
 0x10b   :  { %1149 = vst [vmem:[#allocation10 + $0xa0] sm:$0xff] %v1053_v56  ;;  %v713_v57 = vpop.f32.mrf.mxu2  ;;  %v457_v60 = vpop.f32.mrf.mxu0 }
 0x10c   :  { %v714_v58 = vadd.f32 %v713_v57, %v1598_v29  ;;  %v842_v59 = vpop.f32.mrf.mxu3  ;;  %v458_v62 = vadd.f32 %v457_v60, %v1595_v19  ;;  %v586_v63 = vpop.f32.mrf.mxu1 }
 0x10e   :  { %v843_v0 = vadd.f32 %v842_v59, %v714_v58  ;;  %v587_v2 = vadd.f32 %v586_v63, %v458_v62  ;;  %v966_v59 = vld [vmem:[#allocation8 + $0xe8] sm:$0xff]  ;;  %v967_v63 = vld [vmem:[#allocation8 + $0xf0] sm:$0xff] }
 0x110   :  { %v1054_v3 = vadd.f32 %v958_v61, %v843_v0  ;;  %v1055_v6 = vadd.f32 %v959_v1, %v587_v2  ;;  %v143_v2 = vld [vmem:[#allocation2 + $0x200] sm:$0xff] }
 0x112   :  { %1150 = vst [vmem:[#allocation10 + $0xa8] sm:$0xff] %v1054_v3  ;;  %v145_v3 = vld [vmem:[#allocation2 + $0x210] sm:$0xff] }
 0x113   :  { %1151 = vst [vmem:[#allocation10 + $0xb0] sm:$0xff] %v1055_v6  ;;  %v715_v9 = vpop.f32.mrf.mxu2  ;;  %v460_v13 = vpop.f32.mrf.mxu0  ;;  %v146_v6 = vld [vmem:[#allocation2 + $0x218] sm:$0xff]  ;;  %v207_v8 = vpack.c.bf16 %v145_v3, %v143_v2  ;;  %v152_v3 = vld [vmem:[#allocation2 + $0x248] sm:$0xff] }
 0x114   :  { %v716_v11 = vadd.f32 %v715_v9, %v1598_v29  ;;  %v844_v12 = vpop.f32.mrf.mxu3  ;;  %v461_v16 = vadd.f32 %v460_v13, %v1595_v19  ;;  %v589_v17 = vpop.f32.mrf.mxu1  ;;  %v968_v13 = vld [vmem:[#allocation8 + $0xf8] sm:$0xff] }
 0x116   :  { %v845_v18 = vadd.f32 %v844_v12, %v716_v11  ;;  %v590_v21 = vadd.f32 %v589_v17, %v461_v16  ;;  %499 = vmatmul.bf16.gmra.mxu0 %v203_v10  ;;  %v208_v12 = vpack.c.bf16 %v146_v6, %v144_v5  ;;  %v969_v17 = vld [vmem:[#allocation8 + $0x100] sm:$0xff] }
 0x117   :  { %628 = vmatmul.bf16.gmra.mxu1 %v204_v14 }
 0x118   :  { %v1056_v22 = vadd.f32 %v960_v15, %v845_v18  ;;  %757 = vmatmul.bf16.gmra.mxu2 %v203_v10  ;;  %v1057_v23 = vadd.f32 %v961_v20, %v590_v21 }
 0x119   :  { %886 = vmatmul.bf16.gmra.mxu3 %v204_v14 }
 0x11a   :  { %1152 = vst [vmem:[#allocation10 + $0xb8] sm:$0xff] %v1056_v22 }
 0x11b   :  { %1153 = vst [vmem:[#allocation10 + $0xc0] sm:$0xff] %v1057_v23  ;;  %v718_v24 = vpop.f32.mrf.mxu2  ;;  %v462_v27 = vpop.f32.mrf.mxu0 }
 0x11c   :  { %v719_v25 = vadd.f32 %v718_v24, %v1598_v29  ;;  %v847_v26 = vpop.f32.mrf.mxu3  ;;  %v463_v30 = vadd.f32 %v462_v27, %v1595_v19  ;;  %v591_v31 = vpop.f32.mrf.mxu1 }
 0x11e   :  { %v848_v32 = vadd.f32 %v847_v26, %v719_v25  ;;  %v592_v34 = vadd.f32 %v591_v31, %v463_v30  ;;  %v970_v26 = vld [vmem:[#allocation8 + $0x108] sm:$0xff]  ;;  %v971_v31 = vld [vmem:[#allocation8 + $0x110] sm:$0xff] }
 0x120   :  { %v1058_v35 = vadd.f32 %v962_v28, %v848_v32  ;;  %v1059_v38 = vadd.f32 %v963_v33, %v592_v34  ;;  %v147_v34 = vld [vmem:[#allocation2 + $0x220] sm:$0xff] }
 0x122   :  { %1154 = vst [vmem:[#allocation10 + $0xc8] sm:$0xff] %v1058_v35  ;;  %v149_v35 = vld [vmem:[#allocation2 + $0x230] sm:$0xff] }
 0x123   :  { %1155 = vst [vmem:[#allocation10 + $0xd0] sm:$0xff] %v1059_v38  ;;  %v720_v41 = vpop.f32.mrf.mxu2  ;;  %v465_v45 = vpop.f32.mrf.mxu0  ;;  %v150_v38 = vld [vmem:[#allocation2 + $0x238] sm:$0xff]  ;;  %v209_v40 = vpack.c.bf16 %v149_v35, %v147_v34  ;;  %v156_v35 = vld [vmem:[#allocation2 + $0x268] sm:$0xff] }
 0x124   :  { %v721_v43 = vadd.f32 %v720_v41, %v1598_v29  ;;  %v849_v44 = vpop.f32.mrf.mxu3  ;;  %v466_v48 = vadd.f32 %v465_v45, %v1595_v19  ;;  %v594_v49 = vpop.f32.mrf.mxu1  ;;  %v972_v45 = vld [vmem:[#allocation8 + $0x118] sm:$0xff] }
 0x126   :  { %v850_v50 = vadd.f32 %v849_v44, %v721_v43  ;;  %v595_v52 = vadd.f32 %v594_v49, %v466_v48  ;;  %504 = vmatmul.bf16.gmra.mxu0 %v205_v42  ;;  %v210_v44 = vpack.c.bf16 %v150_v38, %v148_v37  ;;  %v973_v49 = vld [vmem:[#allocation8 + $0x120] sm:$0xff] }
 0x127   :  { %633 = vmatmul.bf16.gmra.mxu1 %v206_v46 }
 0x128   :  { %v1060_v53 = vadd.f32 %v964_v47, %v850_v50  ;;  %762 = vmatmul.bf16.gmra.mxu2 %v205_v42  ;;  %v1061_v54 = vadd.f32 %v965_v51, %v595_v52 }
 0x129   :  { %891 = vmatmul.bf16.gmra.mxu3 %v206_v46 }
 0x12a   :  { %1156 = vst [vmem:[#allocation10 + $0xd8] sm:$0xff] %v1060_v53 }
 0x12b   :  { %1157 = vst [vmem:[#allocation10 + $0xe0] sm:$0xff] %v1061_v54  ;;  %v723_v55 = vpop.f32.mrf.mxu2  ;;  %v467_v58 = vpop.f32.mrf.mxu0 }
 0x12c   :  { %v724_v56 = vadd.f32 %v723_v55, %v1598_v29  ;;  %v852_v57 = vpop.f32.mrf.mxu3  ;;  %v468_v60 = vadd.f32 %v467_v58, %v1595_v19  ;;  %v596_v61 = vpop.f32.mrf.mxu1 }
 0x12e   :  { %v853_v62 = vadd.f32 %v852_v57, %v724_v56  ;;  %v597_v0 = vadd.f32 %v596_v61, %v468_v60  ;;  %v974_v57 = vld [vmem:[#allocation8 + $0x128] sm:$0xff]  ;;  %v975_v61 = vld [vmem:[#allocation8 + $0x130] sm:$0xff] }
 0x130   :  { %v1062_v1 = vadd.f32 %v966_v59, %v853_v62  ;;  %v1063_v4 = vadd.f32 %v967_v63, %v597_v0  ;;  %v151_v0 = vld [vmem:[#allocation2 + $0x240] sm:$0xff] }
 0x132   :  { %1158 = vst [vmem:[#allocation10 + $0xe8] sm:$0xff] %v1062_v1  ;;  %v153_v1 = vld [vmem:[#allocation2 + $0x250] sm:$0xff] }
 0x133   :  { %1159 = vst [vmem:[#allocation10 + $0xf0] sm:$0xff] %v1063_v4  ;;  %v725_v7 = vpop.f32.mrf.mxu2  ;;  %v470_v11 = vpop.f32.mrf.mxu0  ;;  %v154_v4 = vld [vmem:[#allocation2 + $0x258] sm:$0xff]  ;;  %v211_v6 = vpack.c.bf16 %v153_v1, %v151_v0  ;;  %v160_v1 = vld [vmem:[#allocation2 + $0x288] sm:$0xff] }
 0x134   :  { %v726_v9 = vadd.f32 %v725_v7, %v1598_v29  ;;  %v854_v10 = vpop.f32.mrf.mxu3  ;;  %v471_v14 = vadd.f32 %v470_v11, %v1595_v19  ;;  %v599_v15 = vpop.f32.mrf.mxu1  ;;  %v976_v11 = vld [vmem:[#allocation8 + $0x138] sm:$0xff] }
 0x136   :  { %v855_v16 = vadd.f32 %v854_v10, %v726_v9  ;;  %v600_v18 = vadd.f32 %v599_v15, %v471_v14  ;;  %509 = vmatmul.bf16.gmra.mxu0 %v207_v8  ;;  %v212_v10 = vpack.c.bf16 %v154_v4, %v152_v3  ;;  %v977_v15 = vld [vmem:[#allocation8 + $0x140] sm:$0xff] }
 0x137   :  { %638 = vmatmul.bf16.gmra.mxu1 %v208_v12 }
 0x138   :  { %v1064_v20 = vadd.f32 %v968_v13, %v855_v16  ;;  %767 = vmatmul.bf16.gmra.mxu2 %v207_v8  ;;  %v1065_v21 = vadd.f32 %v969_v17, %v600_v18 }
 0x139   :  { %896 = vmatmul.bf16.gmra.mxu3 %v208_v12 }
 0x13a   :  { %1160 = vst [vmem:[#allocation10 + $0xf8] sm:$0xff] %v1064_v20 }
 0x13b   :  { %1161 = vst [vmem:[#allocation10 + $0x100] sm:$0xff] %v1065_v21  ;;  %v728_v22 = vpop.f32.mrf.mxu2  ;;  %v472_v25 = vpop.f32.mrf.mxu0 }
 0x13c   :  { %v729_v23 = vadd.f32 %v728_v22, %v1598_v29  ;;  %v857_v24 = vpop.f32.mrf.mxu3  ;;  %v473_v27 = vadd.f32 %v472_v25, %v1595_v19  ;;  %v601_v28 = vpop.f32.mrf.mxu1 }
 0x13e   :  { %v858_v30 = vadd.f32 %v857_v24, %v729_v23  ;;  %v602_v32 = vadd.f32 %v601_v28, %v473_v27  ;;  %v978_v24 = vld [vmem:[#allocation8 + $0x148] sm:$0xff]  ;;  %v979_v28 = vld [vmem:[#allocation8 + $0x150] sm:$0xff] }
 0x140   :  { %v1066_v33 = vadd.f32 %v970_v26, %v858_v30  ;;  %v1067_v36 = vadd.f32 %v971_v31, %v602_v32  ;;  %v155_v32 = vld [vmem:[#allocation2 + $0x260] sm:$0xff] }
 0x142   :  { %1162 = vst [vmem:[#allocation10 + $0x108] sm:$0xff] %v1066_v33  ;;  %v157_v33 = vld [vmem:[#allocation2 + $0x270] sm:$0xff] }
 0x143   :  { %1163 = vst [vmem:[#allocation10 + $0x110] sm:$0xff] %v1067_v36  ;;  %v730_v39 = vpop.f32.mrf.mxu2  ;;  %v475_v43 = vpop.f32.mrf.mxu0  ;;  %v158_v36 = vld [vmem:[#allocation2 + $0x278] sm:$0xff]  ;;  %v213_v38 = vpack.c.bf16 %v157_v33, %v155_v32  ;;  %v164_v33 = vld [vmem:[#allocation2 + $0x2a8] sm:$0xff] }
 0x144   :  { %v731_v41 = vadd.f32 %v730_v39, %v1598_v29  ;;  %v859_v42 = vpop.f32.mrf.mxu3  ;;  %v476_v46 = vadd.f32 %v475_v43, %v1595_v19  ;;  %v604_v47 = vpop.f32.mrf.mxu1  ;;  %v980_v43 = vld [vmem:[#allocation8 + $0x158] sm:$0xff] }
 0x146   :  { %v860_v48 = vadd.f32 %v859_v42, %v731_v41  ;;  %v605_v50 = vadd.f32 %v604_v47, %v476_v46  ;;  %514 = vmatmul.bf16.gmra.mxu0 %v209_v40  ;;  %v214_v42 = vpack.c.bf16 %v158_v36, %v156_v35  ;;  %v981_v47 = vld [vmem:[#allocation8 + $0x160] sm:$0xff] }
 0x147   :  { %643 = vmatmul.bf16.gmra.mxu1 %v210_v44 }
 0x148   :  { %v1068_v51 = vadd.f32 %v972_v45, %v860_v48  ;;  %772 = vmatmul.bf16.gmra.mxu2 %v209_v40  ;;  %v1069_v52 = vadd.f32 %v973_v49, %v605_v50 }
 0x149   :  { %901 = vmatmul.bf16.gmra.mxu3 %v210_v44 }
 0x14a   :  { %1164 = vst [vmem:[#allocation10 + $0x118] sm:$0xff] %v1068_v51 }
 0x14b   :  { %1165 = vst [vmem:[#allocation10 + $0x120] sm:$0xff] %v1069_v52  ;;  %v733_v53 = vpop.f32.mrf.mxu2  ;;  %v477_v56 = vpop.f32.mrf.mxu0 }
 0x14c   :  { %v734_v54 = vadd.f32 %v733_v53, %v1598_v29  ;;  %v862_v55 = vpop.f32.mrf.mxu3  ;;  %v478_v58 = vadd.f32 %v477_v56, %v1595_v19  ;;  %v606_v59 = vpop.f32.mrf.mxu1 }
 0x14e   :  { %v863_v60 = vadd.f32 %v862_v55, %v734_v54  ;;  %v607_v62 = vadd.f32 %v606_v59, %v478_v58  ;;  %v982_v55 = vld [vmem:[#allocation8 + $0x168] sm:$0xff]  ;;  %v983_v59 = vld [vmem:[#allocation8 + $0x170] sm:$0xff] }
 0x150   :  { %v1070_v63 = vadd.f32 %v974_v57, %v863_v60  ;;  %v1071_v2 = vadd.f32 %v975_v61, %v607_v62  ;;  %v159_v62 = vld [vmem:[#allocation2 + $0x280] sm:$0xff] }
 0x152   :  { %1166 = vst [vmem:[#allocation10 + $0x128] sm:$0xff] %v1070_v63  ;;  %v161_v63 = vld [vmem:[#allocation2 + $0x290] sm:$0xff] }
 0x153   :  { %1167 = vst [vmem:[#allocation10 + $0x130] sm:$0xff] %v1071_v2  ;;  %v735_v5 = vpop.f32.mrf.mxu2  ;;  %v480_v9 = vpop.f32.mrf.mxu0  ;;  %v162_v2 = vld [vmem:[#allocation2 + $0x298] sm:$0xff]  ;;  %v215_v4 = vpack.c.bf16 %v161_v63, %v159_v62  ;;  %v168_v63 = vld [vmem:[#allocation2 + $0x2c8] sm:$0xff] }
 0x154   :  { %v736_v7 = vadd.f32 %v735_v5, %v1598_v29  ;;  %v864_v8 = vpop.f32.mrf.mxu3  ;;  %v481_v12 = vadd.f32 %v480_v9, %v1595_v19  ;;  %v609_v13 = vpop.f32.mrf.mxu1  ;;  %v984_v9 = vld [vmem:[#allocation8 + $0x178] sm:$0xff] }
 0x156   :  { %v865_v14 = vadd.f32 %v864_v8, %v736_v7  ;;  %v610_v16 = vadd.f32 %v609_v13, %v481_v12  ;;  %519 = vmatmul.bf16.gmra.mxu0 %v211_v6  ;;  %v216_v8 = vpack.c.bf16 %v162_v2, %v160_v1  ;;  %v985_v13 = vld [vmem:[#allocation8 + $0x180] sm:$0xff] }
 0x157   :  { %648 = vmatmul.bf16.gmra.mxu1 %v212_v10 }
 0x158   :  { %v1072_v17 = vadd.f32 %v976_v11, %v865_v14  ;;  %777 = vmatmul.bf16.gmra.mxu2 %v211_v6  ;;  %v1073_v18 = vadd.f32 %v977_v15, %v610_v16 }
 0x159   :  { %906 = vmatmul.bf16.gmra.mxu3 %v212_v10 }
 0x15a   :  { %1168 = vst [vmem:[#allocation10 + $0x138] sm:$0xff] %v1072_v17 }
 0x15b   :  { %1169 = vst [vmem:[#allocation10 + $0x140] sm:$0xff] %v1073_v18  ;;  %v738_v20 = vpop.f32.mrf.mxu2  ;;  %v482_v23 = vpop.f32.mrf.mxu0 }
 0x15c   :  { %v739_v21 = vadd.f32 %v738_v20, %v1598_v29  ;;  %v867_v22 = vpop.f32.mrf.mxu3  ;;  %v483_v25 = vadd.f32 %v482_v23, %v1595_v19  ;;  %v611_v26 = vpop.f32.mrf.mxu1 }
 0x15e   :  { %v868_v27 = vadd.f32 %v867_v22, %v739_v21  ;;  %v612_v30 = vadd.f32 %v611_v26, %v483_v25  ;;  %v986_v22 = vld [vmem:[#allocation8 + $0x188] sm:$0xff]  ;;  %v987_v26 = vld [vmem:[#allocation8 + $0x190] sm:$0xff] }
 0x160   :  { %v1074_v31 = vadd.f32 %v978_v24, %v868_v27  ;;  %v1075_v34 = vadd.f32 %v979_v28, %v612_v30  ;;  %v163_v30 = vld [vmem:[#allocation2 + $0x2a0] sm:$0xff] }
 0x162   :  { %1170 = vst [vmem:[#allocation10 + $0x148] sm:$0xff] %v1074_v31  ;;  %v165_v31 = vld [vmem:[#allocation2 + $0x2b0] sm:$0xff] }
 0x163   :  { %1171 = vst [vmem:[#allocation10 + $0x150] sm:$0xff] %v1075_v34  ;;  %v740_v37 = vpop.f32.mrf.mxu2  ;;  %v485_v41 = vpop.f32.mrf.mxu0  ;;  %v166_v34 = vld [vmem:[#allocation2 + $0x2b8] sm:$0xff]  ;;  %v217_v36 = vpack.c.bf16 %v165_v31, %v163_v30  ;;  %v172_v31 = vld [vmem:[#allocation2 + $0x2e8] sm:$0xff] }
 0x164   :  { %v741_v39 = vadd.f32 %v740_v37, %v1598_v29  ;;  %v869_v40 = vpop.f32.mrf.mxu3  ;;  %v486_v44 = vadd.f32 %v485_v41, %v1595_v19  ;;  %v614_v45 = vpop.f32.mrf.mxu1  ;;  %v988_v41 = vld [vmem:[#allocation8 + $0x198] sm:$0xff] }
 0x166   :  { %v870_v46 = vadd.f32 %v869_v40, %v741_v39  ;;  %v615_v48 = vadd.f32 %v614_v45, %v486_v44  ;;  %524 = vmatmul.bf16.gmra.mxu0 %v213_v38  ;;  %v218_v40 = vpack.c.bf16 %v166_v34, %v164_v33  ;;  %v989_v45 = vld [vmem:[#allocation8 + $0x1a0] sm:$0xff] }
 0x167   :  { %653 = vmatmul.bf16.gmra.mxu1 %v214_v42 }
 0x168   :  { %v1076_v49 = vadd.f32 %v980_v43, %v870_v46  ;;  %782 = vmatmul.bf16.gmra.mxu2 %v213_v38  ;;  %v1077_v50 = vadd.f32 %v981_v47, %v615_v48 }
 0x169   :  { %911 = vmatmul.bf16.gmra.mxu3 %v214_v42 }
 0x16a   :  { %1172 = vst [vmem:[#allocation10 + $0x158] sm:$0xff] %v1076_v49 }
 0x16b   :  { %1173 = vst [vmem:[#allocation10 + $0x160] sm:$0xff] %v1077_v50  ;;  %v743_v51 = vpop.f32.mrf.mxu2  ;;  %v487_v54 = vpop.f32.mrf.mxu0 }
 0x16c   :  { %v744_v52 = vadd.f32 %v743_v51, %v1598_v29  ;;  %v872_v53 = vpop.f32.mrf.mxu3  ;;  %v488_v56 = vadd.f32 %v487_v54, %v1595_v19  ;;  %v616_v57 = vpop.f32.mrf.mxu1 }
 0x16e   :  { %v873_v58 = vadd.f32 %v872_v53, %v744_v52  ;;  %v617_v60 = vadd.f32 %v616_v57, %v488_v56  ;;  %v990_v53 = vld [vmem:[#allocation8 + $0x1a8] sm:$0xff]  ;;  %v991_v57 = vld [vmem:[#allocation8 + $0x1b0] sm:$0xff] }
 0x170   :  { %v1078_v61 = vadd.f32 %v982_v55, %v873_v58  ;;  %v1079_v0 = vadd.f32 %v983_v59, %v617_v60  ;;  %v167_v60 = vld [vmem:[#allocation2 + $0x2c0] sm:$0xff] }
 0x172   :  { %1174 = vst [vmem:[#allocation10 + $0x168] sm:$0xff] %v1078_v61  ;;  %v169_v61 = vld [vmem:[#allocation2 + $0x2d0] sm:$0xff] }
 0x173   :  { %1175 = vst [vmem:[#allocation10 + $0x170] sm:$0xff] %v1079_v0  ;;  %v745_v3 = vpop.f32.mrf.mxu2  ;;  %v490_v7 = vpop.f32.mrf.mxu0  ;;  %v170_v0 = vld [vmem:[#allocation2 + $0x2d8] sm:$0xff]  ;;  %v219_v2 = vpack.c.bf16 %v169_v61, %v167_v60 }
 0x174   :  { %v746_v5 = vadd.f32 %v745_v3, %v1598_v29  ;;  %v874_v6 = vpop.f32.mrf.mxu3  ;;  %v491_v10 = vadd.f32 %v490_v7, %v1595_v19  ;;  %v619_v11 = vpop.f32.mrf.mxu1  ;;  %v992_v7 = vld [vmem:[#allocation8 + $0x1b8] sm:$0xff] }
 0x176   :  { %v875_v12 = vadd.f32 %v874_v6, %v746_v5  ;;  %v620_v14 = vadd.f32 %v619_v11, %v491_v10  ;;  %529 = vmatmul.bf16.gmra.mxu0 %v215_v4  ;;  %v220_v6 = vpack.c.bf16 %v170_v0, %v168_v63  ;;  %v993_v11 = vld [vmem:[#allocation8 + $0x1c0] sm:$0xff]  ;;  %v1000_v63 = vld [vmem:[#allocation8 + $0x1f8] sm:$0xff] }
 0x177   :  { %658 = vmatmul.bf16.gmra.mxu1 %v216_v8 }
 0x178   :  { %v1080_v15 = vadd.f32 %v984_v9, %v875_v12  ;;  %787 = vmatmul.bf16.gmra.mxu2 %v215_v4  ;;  %v1081_v16 = vadd.f32 %v985_v13, %v620_v14 }
 0x179   :  { %916 = vmatmul.bf16.gmra.mxu3 %v216_v8 }
 0x17a   :  { %1176 = vst [vmem:[#allocation10 + $0x178] sm:$0xff] %v1080_v15 }
 0x17b   :  { %1177 = vst [vmem:[#allocation10 + $0x180] sm:$0xff] %v1081_v16  ;;  %v748_v17 = vpop.f32.mrf.mxu2  ;;  %v492_v21 = vpop.f32.mrf.mxu0 }
 0x17c   :  { %v749_v18 = vadd.f32 %v748_v17, %v1598_v29  ;;  %v877_v20 = vpop.f32.mrf.mxu3  ;;  %v493_v23 = vadd.f32 %v492_v21, %v1595_v19  ;;  %v621_v24 = vpop.f32.mrf.mxu1 }
 0x17e   :  { %v878_v25 = vadd.f32 %v877_v20, %v749_v18  ;;  %v622_v27 = vadd.f32 %v621_v24, %v493_v23  ;;  %v994_v20 = vld [vmem:[#allocation8 + $0x1c8] sm:$0xff]  ;;  %v995_v24 = vld [vmem:[#allocation8 + $0x1d0] sm:$0xff] }
 0x180   :  { %v1082_v28 = vadd.f32 %v986_v22, %v878_v25  ;;  %v1083_v32 = vadd.f32 %v987_v26, %v622_v27  ;;  %v171_v27 = vld [vmem:[#allocation2 + $0x2e0] sm:$0xff] }
 0x182   :  { %1178 = vst [vmem:[#allocation10 + $0x188] sm:$0xff] %v1082_v28  ;;  %v173_v28 = vld [vmem:[#allocation2 + $0x2f0] sm:$0xff] }
 0x183   :  { %1179 = vst [vmem:[#allocation10 + $0x190] sm:$0xff] %v1083_v32  ;;  %v750_v35 = vpop.f32.mrf.mxu2  ;;  %v495_v39 = vpop.f32.mrf.mxu0  ;;  %v174_v32 = vld [vmem:[#allocation2 + $0x2f8] sm:$0xff]  ;;  %v221_v34 = vpack.c.bf16 %v173_v28, %v171_v27  ;;  %v1005_v28 = vld [vmem:[#allocation8 + $0x220] sm:$0xff] }
 0x184   :  { %v751_v37 = vadd.f32 %v750_v35, %v1598_v29  ;;  %v879_v38 = vpop.f32.mrf.mxu3  ;;  %v496_v42 = vadd.f32 %v495_v39, %v1595_v19  ;;  %v624_v43 = vpop.f32.mrf.mxu1  ;;  %v996_v39 = vld [vmem:[#allocation8 + $0x1d8] sm:$0xff] }
 0x186   :  { %v880_v44 = vadd.f32 %v879_v38, %v751_v37  ;;  %v625_v46 = vadd.f32 %v624_v43, %v496_v42  ;;  %534 = vmatmul.bf16.gmra.mxu0 %v217_v36  ;;  %v222_v38 = vpack.c.bf16 %v174_v32, %v172_v31  ;;  %v997_v43 = vld [vmem:[#allocation8 + $0x1e0] sm:$0xff] }
 0x187   :  { %663 = vmatmul.bf16.gmra.mxu1 %v218_v40 }
 0x188   :  { %v1084_v47 = vadd.f32 %v988_v41, %v880_v44  ;;  %792 = vmatmul.bf16.gmra.mxu2 %v217_v36  ;;  %v1085_v48 = vadd.f32 %v989_v45, %v625_v46 }
 0x189   :  { %921 = vmatmul.bf16.gmra.mxu3 %v218_v40 }
 0x18a   :  { %1180 = vst [vmem:[#allocation10 + $0x198] sm:$0xff] %v1084_v47 }
 0x18b   :  { %1181 = vst [vmem:[#allocation10 + $0x1a0] sm:$0xff] %v1085_v48  ;;  %v753_v49 = vpop.f32.mrf.mxu2  ;;  %v497_v52 = vpop.f32.mrf.mxu0 }
 0x18c   :  { %v754_v50 = vadd.f32 %v753_v49, %v1598_v29  ;;  %v882_v51 = vpop.f32.mrf.mxu3  ;;  %v498_v54 = vadd.f32 %v497_v52, %v1595_v19  ;;  %v626_v55 = vpop.f32.mrf.mxu1 }
 0x18e   :  { %v883_v56 = vadd.f32 %v882_v51, %v754_v50  ;;  %v627_v58 = vadd.f32 %v626_v55, %v498_v54  ;;  %v998_v51 = vld [vmem:[#allocation8 + $0x1e8] sm:$0xff]  ;;  %v999_v55 = vld [vmem:[#allocation8 + $0x1f0] sm:$0xff] }
 0x190   :  { %v1086_v59 = vadd.f32 %v990_v53, %v883_v56  ;;  %v1087_v62 = vadd.f32 %v991_v57, %v627_v58 }
 0x192   :  { %1182 = vst [vmem:[#allocation10 + $0x1a8] sm:$0xff] %v1086_v59 }
 0x193   :  { %1183 = vst [vmem:[#allocation10 + $0x1b0] sm:$0xff] %v1087_v62  ;;  %v755_v1 = vpop.f32.mrf.mxu2  ;;  %v500_v5 = vpop.f32.mrf.mxu0 }
 0x194   :  { %v756_v3 = vadd.f32 %v755_v1, %v1598_v29  ;;  %v884_v4 = vpop.f32.mrf.mxu3  ;;  %v501_v8 = vadd.f32 %v500_v5, %v1595_v19  ;;  %v629_v9 = vpop.f32.mrf.mxu1 }
 0x196   :  { %v885_v10 = vadd.f32 %v884_v4, %v756_v3  ;;  %v630_v12 = vadd.f32 %v629_v9, %v501_v8  ;;  %539 = vmatmul.bf16.gmra.mxu0 %v219_v2  ;;  %v1001_v3 = vld [vmem:[#allocation8 + $0x200] sm:$0xff] }
 0x197   :  { %668 = vmatmul.bf16.gmra.mxu1 %v220_v6 }
 0x198   :  { %v1088_v13 = vadd.f32 %v992_v7, %v885_v10  ;;  %797 = vmatmul.bf16.gmra.mxu2 %v219_v2  ;;  %v1089_v14 = vadd.f32 %v993_v11, %v630_v12  ;;  %v1002_v11 = vld [vmem:[#allocation8 + $0x208] sm:$0xff] }
 0x199   :  { %926 = vmatmul.bf16.gmra.mxu3 %v220_v6 }
 0x19a   :  { %1184 = vst [vmem:[#allocation10 + $0x1b8] sm:$0xff] %v1088_v13 }
 0x19b   :  { %1185 = vst [vmem:[#allocation10 + $0x1c0] sm:$0xff] %v1089_v14  ;;  %v758_v15 = vpop.f32.mrf.mxu2  ;;  %v502_v18 = vpop.f32.mrf.mxu0 }
 0x19c   :  { %v759_v16 = vadd.f32 %v758_v15, %v1598_v29  ;;  %v887_v17 = vpop.f32.mrf.mxu3  ;;  %v503_v21 = vadd.f32 %v502_v18, %v1595_v19  ;;  %v631_v22 = vpop.f32.mrf.mxu1  ;;  %v1003_v15 = vld [vmem:[#allocation8 + $0x210] sm:$0xff] }
 0x19e   :  { %v888_v23 = vadd.f32 %v887_v17, %v759_v16  ;;  %v632_v25 = vadd.f32 %v631_v22, %v503_v21 }
 0x1a0   :  { %v1090_v26 = vadd.f32 %v994_v20, %v888_v23  ;;  %v1091_v30 = vadd.f32 %v995_v24, %v632_v25  ;;  %v1004_v24 = vld [vmem:[#allocation8 + $0x218] sm:$0xff] }
 0x1a2   :  { %1186 = vst [vmem:[#allocation10 + $0x1c8] sm:$0xff] %v1090_v26 }
 0x1a3   :  { %1187 = vst [vmem:[#allocation10 + $0x1d0] sm:$0xff] %v1091_v30  ;;  %v760_v33 = vpop.f32.mrf.mxu2  ;;  %v505_v37 = vpop.f32.mrf.mxu0 }
 0x1a4   :  { %v761_v35 = vadd.f32 %v760_v33, %v1598_v29  ;;  %v889_v36 = vpop.f32.mrf.mxu3  ;;  %v506_v40 = vadd.f32 %v505_v37, %v1595_v19  ;;  %v634_v41 = vpop.f32.mrf.mxu1  ;;  %v1006_v37 = vld [vmem:[#allocation8 + $0x228] sm:$0xff] }
 0x1a6   :  { %v890_v42 = vadd.f32 %v889_v36, %v761_v35  ;;  %v635_v44 = vadd.f32 %v634_v41, %v506_v40  ;;  %544 = vmatmul.bf16.gmra.mxu0 %v221_v34  ;;  %v1007_v41 = vld [vmem:[#allocation8 + $0x230] sm:$0xff] }
 0x1a7   :  { %673 = vmatmul.bf16.gmra.mxu1 %v222_v38 }
 0x1a8   :  { %v1092_v45 = vadd.f32 %v996_v39, %v890_v42  ;;  %802 = vmatmul.bf16.gmra.mxu2 %v221_v34  ;;  %v1093_v46 = vadd.f32 %v997_v43, %v635_v44 }
 0x1a9   :  { %931 = vmatmul.bf16.gmra.mxu3 %v222_v38 }
 0x1aa   :  { %1188 = vst [vmem:[#allocation10 + $0x1d8] sm:$0xff] %v1092_v45 }
 0x1ab   :  { %1189 = vst [vmem:[#allocation10 + $0x1e0] sm:$0xff] %v1093_v46  ;;  %v763_v47 = vpop.f32.mrf.mxu2  ;;  %v507_v50 = vpop.f32.mrf.mxu0 }
 0x1ac   :  { %v764_v48 = vadd.f32 %v763_v47, %v1598_v29  ;;  %v892_v49 = vpop.f32.mrf.mxu3  ;;  %v508_v52 = vadd.f32 %v507_v50, %v1595_v19  ;;  %v636_v53 = vpop.f32.mrf.mxu1 }
 0x1ae   :  { %v893_v54 = vadd.f32 %v892_v49, %v764_v48  ;;  %v637_v56 = vadd.f32 %v636_v53, %v508_v52  ;;  %v1008_v49 = vld [vmem:[#allocation8 + $0x238] sm:$0xff]  ;;  %v1009_v53 = vld [vmem:[#allocation8 + $0x240] sm:$0xff] }
 0x1b0   :  { %v1094_v57 = vadd.f32 %v998_v51, %v893_v54  ;;  %v1095_v58 = vadd.f32 %v999_v55, %v637_v56 }
 0x1b2   :  { %1190 = vst [vmem:[#allocation10 + $0x1e8] sm:$0xff] %v1094_v57 }
 0x1b3   :  { %1191 = vst [vmem:[#allocation10 + $0x1f0] sm:$0xff] %v1095_v58  ;;  %v765_v59 = vpop.f32.mrf.mxu2  ;;  %v510_v62 = vpop.f32.mrf.mxu0 }
 0x1b4   :  { %v766_v60 = vadd.f32 %v765_v59, %v1598_v29  ;;  %v894_v61 = vpop.f32.mrf.mxu3  ;;  %v511_v0 = vadd.f32 %v510_v62, %v1595_v19  ;;  %v639_v1 = vpop.f32.mrf.mxu1 }
 0x1b6   :  { %v895_v2 = vadd.f32 %v894_v61, %v766_v60  ;;  %v640_v4 = vadd.f32 %v639_v1, %v511_v0  ;;  %v1010_v61 = vld [vmem:[#allocation8 + $0x248] sm:$0xff]  ;;  %v1011_v1 = vld [vmem:[#allocation8 + $0x250] sm:$0xff] }
 0x1b8   :  { %v1096_v5 = vadd.f32 %v1000_v63, %v895_v2  ;;  %v1097_v6 = vadd.f32 %v1001_v3, %v640_v4 }
 0x1ba   :  { %1192 = vst [vmem:[#allocation10 + $0x1f8] sm:$0xff] %v1096_v5 }
 0x1bb   :  { %1193 = vst [vmem:[#allocation10 + $0x200] sm:$0xff] %v1097_v6  ;;  %v768_v7 = vpop.f32.mrf.mxu2  ;;  %v512_v10 = vpop.f32.mrf.mxu0 }
 0x1bc   :  { %v769_v8 = vadd.f32 %v768_v7, %v1598_v29  ;;  %v897_v9 = vpop.f32.mrf.mxu3  ;;  %v513_v12 = vadd.f32 %v512_v10, %v1595_v19  ;;  %v641_v13 = vpop.f32.mrf.mxu1 }
 0x1be   :  { %v898_v14 = vadd.f32 %v897_v9, %v769_v8  ;;  %v642_v16 = vadd.f32 %v641_v13, %v513_v12  ;;  %v1012_v9 = vld [vmem:[#allocation8 + $0x258] sm:$0xff]  ;;  %v1013_v13 = vld [vmem:[#allocation8 + $0x260] sm:$0xff] }
 0x1c0   :  { %v1098_v17 = vadd.f32 %v1002_v11, %v898_v14  ;;  %v1099_v18 = vadd.f32 %v1003_v15, %v642_v16 }
 0x1c2   :  { %1194 = vst [vmem:[#allocation10 + $0x208] sm:$0xff] %v1098_v17 }
 0x1c3   :  { %1195 = vst [vmem:[#allocation10 + $0x210] sm:$0xff] %v1099_v18  ;;  %v770_v20 = vpop.f32.mrf.mxu2  ;;  %v515_v23 = vpop.f32.mrf.mxu0 }
 0x1c4   :  { %v771_v21 = vadd.f32 %v770_v20, %v1598_v29  ;;  %v899_v22 = vpop.f32.mrf.mxu3  ;;  %v516_v25 = vadd.f32 %v515_v23, %v1595_v19  ;;  %v644_v26 = vpop.f32.mrf.mxu1 }
 0x1c6   :  { %v900_v27 = vadd.f32 %v899_v22, %v771_v21  ;;  %v645_v30 = vadd.f32 %v644_v26, %v516_v25  ;;  %v1014_v22 = vld [vmem:[#allocation8 + $0x268] sm:$0xff]  ;;  %v1015_v26 = vld [vmem:[#allocation8 + $0x270] sm:$0xff] }
 0x1c8   :  { %v1100_v31 = vadd.f32 %v1004_v24, %v900_v27  ;;  %v1101_v32 = vadd.f32 %v1005_v28, %v645_v30 }
 0x1ca   :  { %1196 = vst [vmem:[#allocation10 + $0x218] sm:$0xff] %v1100_v31 }
 0x1cb   :  { %1197 = vst [vmem:[#allocation10 + $0x220] sm:$0xff] %v1101_v32  ;;  %v773_v33 = vpop.f32.mrf.mxu2  ;;  %v517_v36 = vpop.f32.mrf.mxu0 }
 0x1cc   :  { %v774_v34 = vadd.f32 %v773_v33, %v1598_v29  ;;  %v902_v35 = vpop.f32.mrf.mxu3  ;;  %v518_v38 = vadd.f32 %v517_v36, %v1595_v19  ;;  %v646_v39 = vpop.f32.mrf.mxu1 }
 0x1ce   :  { %v903_v40 = vadd.f32 %v902_v35, %v774_v34  ;;  %v647_v42 = vadd.f32 %v646_v39, %v518_v38  ;;  %v1016_v35 = vld [vmem:[#allocation8 + $0x278] sm:$0xff]  ;;  %v1017_v39 = vld [vmem:[#allocation8 + $0x280] sm:$0xff] }
 0x1d0   :  { %v1102_v43 = vadd.f32 %v1006_v37, %v903_v40  ;;  %v1103_v44 = vadd.f32 %v1007_v41, %v647_v42 }
 0x1d2   :  { %1198 = vst [vmem:[#allocation10 + $0x228] sm:$0xff] %v1102_v43 }
 0x1d3   :  { %1199 = vst [vmem:[#allocation10 + $0x230] sm:$0xff] %v1103_v44  ;;  %v775_v45 = vpop.f32.mrf.mxu2  ;;  %v520_v48 = vpop.f32.mrf.mxu0 }
 0x1d4   :  { %v776_v46 = vadd.f32 %v775_v45, %v1598_v29  ;;  %v904_v47 = vpop.f32.mrf.mxu3  ;;  %v521_v50 = vadd.f32 %v520_v48, %v1595_v19  ;;  %v649_v51 = vpop.f32.mrf.mxu1 }
 0x1d6   :  { %v905_v52 = vadd.f32 %v904_v47, %v776_v46  ;;  %v650_v54 = vadd.f32 %v649_v51, %v521_v50  ;;  %v1018_v47 = vld [vmem:[#allocation8 + $0x288] sm:$0xff]  ;;  %v1019_v51 = vld [vmem:[#allocation8 + $0x290] sm:$0xff] }
 0x1d8   :  { %v1104_v55 = vadd.f32 %v1008_v49, %v905_v52  ;;  %v1105_v56 = vadd.f32 %v1009_v53, %v650_v54 }
 0x1da   :  { %1200 = vst [vmem:[#allocation10 + $0x238] sm:$0xff] %v1104_v55 }
 0x1db   :  { %1201 = vst [vmem:[#allocation10 + $0x240] sm:$0xff] %v1105_v56  ;;  %v778_v57 = vpop.f32.mrf.mxu2  ;;  %v522_v60 = vpop.f32.mrf.mxu0 }
 0x1dc   :  { %v779_v58 = vadd.f32 %v778_v57, %v1598_v29  ;;  %v907_v59 = vpop.f32.mrf.mxu3  ;;  %v523_v62 = vadd.f32 %v522_v60, %v1595_v19  ;;  %v651_v63 = vpop.f32.mrf.mxu1 }
 0x1de   :  { %v908_v0 = vadd.f32 %v907_v59, %v779_v58  ;;  %v652_v2 = vadd.f32 %v651_v63, %v523_v62  ;;  %v1020_v59 = vld [vmem:[#allocation8 + $0x298] sm:$0xff]  ;;  %v1021_v63 = vld [vmem:[#allocation8 + $0x2a0] sm:$0xff] }
 0x1e0   :  { %v1106_v3 = vadd.f32 %v1010_v61, %v908_v0  ;;  %v1107_v4 = vadd.f32 %v1011_v1, %v652_v2 }
 0x1e2   :  { %1202 = vst [vmem:[#allocation10 + $0x248] sm:$0xff] %v1106_v3 }
 0x1e3   :  { %1203 = vst [vmem:[#allocation10 + $0x250] sm:$0xff] %v1107_v4  ;;  %v780_v5 = vpop.f32.mrf.mxu2  ;;  %v525_v8 = vpop.f32.mrf.mxu0 }
 0x1e4   :  { %v781_v6 = vadd.f32 %v780_v5, %v1598_v29  ;;  %v909_v7 = vpop.f32.mrf.mxu3  ;;  %v526_v10 = vadd.f32 %v525_v8, %v1595_v19  ;;  %v654_v11 = vpop.f32.mrf.mxu1 }
 0x1e6   :  { %v910_v12 = vadd.f32 %v909_v7, %v781_v6  ;;  %v655_v14 = vadd.f32 %v654_v11, %v526_v10  ;;  %v1022_v7 = vld [vmem:[#allocation8 + $0x2a8] sm:$0xff]  ;;  %v1023_v11 = vld [vmem:[#allocation8 + $0x2b0] sm:$0xff] }
 0x1e8   :  { %v1108_v15 = vadd.f32 %v1012_v9, %v910_v12  ;;  %v1109_v16 = vadd.f32 %v1013_v13, %v655_v14 }
 0x1ea   :  { %1204 = vst [vmem:[#allocation10 + $0x258] sm:$0xff] %v1108_v15 }
 0x1eb   :  { %1205 = vst [vmem:[#allocation10 + $0x260] sm:$0xff] %v1109_v16  ;;  %v783_v17 = vpop.f32.mrf.mxu2  ;;  %v527_v21 = vpop.f32.mrf.mxu0 }
 0x1ec   :  { %v784_v18 = vadd.f32 %v783_v17, %v1598_v29  ;;  %v912_v20 = vpop.f32.mrf.mxu3  ;;  %v528_v23 = vadd.f32 %v527_v21, %v1595_v19  ;;  %v656_v24 = vpop.f32.mrf.mxu1 }
 0x1ee   :  { %v913_v25 = vadd.f32 %v912_v20, %v784_v18  ;;  %v657_v27 = vadd.f32 %v656_v24, %v528_v23  ;;  %v1024_v20 = vld [vmem:[#allocation8 + $0x2b8] sm:$0xff]  ;;  %v1025_v24 = vld [vmem:[#allocation8 + $0x2c0] sm:$0xff] }
 0x1f0   :  { %v1110_v28 = vadd.f32 %v1014_v22, %v913_v25  ;;  %v1111_v30 = vadd.f32 %v1015_v26, %v657_v27 }
 0x1f2   :  { %1206 = vst [vmem:[#allocation10 + $0x268] sm:$0xff] %v1110_v28 }
 0x1f3   :  { %1207 = vst [vmem:[#allocation10 + $0x270] sm:$0xff] %v1111_v30  ;;  %v785_v31 = vpop.f32.mrf.mxu2  ;;  %v530_v34 = vpop.f32.mrf.mxu0 }
 0x1f4   :  { %v786_v32 = vadd.f32 %v785_v31, %v1598_v29  ;;  %v914_v33 = vpop.f32.mrf.mxu3  ;;  %v531_v36 = vadd.f32 %v530_v34, %v1595_v19  ;;  %v659_v37 = vpop.f32.mrf.mxu1 }
 0x1f6   :  { %v915_v38 = vadd.f32 %v914_v33, %v786_v32  ;;  %v660_v40 = vadd.f32 %v659_v37, %v531_v36  ;;  %v1026_v33 = vld [vmem:[#allocation8 + $0x2c8] sm:$0xff]  ;;  %v1027_v37 = vld [vmem:[#allocation8 + $0x2d0] sm:$0xff] }
 0x1f8   :  { %v1112_v41 = vadd.f32 %v1016_v35, %v915_v38  ;;  %v1113_v42 = vadd.f32 %v1017_v39, %v660_v40 }
 0x1fa   :  { %1208 = vst [vmem:[#allocation10 + $0x278] sm:$0xff] %v1112_v41 }
 0x1fb   :  { %1209 = vst [vmem:[#allocation10 + $0x280] sm:$0xff] %v1113_v42  ;;  %v788_v43 = vpop.f32.mrf.mxu2  ;;  %v532_v46 = vpop.f32.mrf.mxu0 }
 0x1fc   :  { %v789_v44 = vadd.f32 %v788_v43, %v1598_v29  ;;  %v917_v45 = vpop.f32.mrf.mxu3  ;;  %v533_v48 = vadd.f32 %v532_v46, %v1595_v19  ;;  %v661_v49 = vpop.f32.mrf.mxu1 }
 0x1fe   :  { %v918_v50 = vadd.f32 %v917_v45, %v789_v44  ;;  %v662_v52 = vadd.f32 %v661_v49, %v533_v48  ;;  %v1028_v45 = vld [vmem:[#allocation8 + $0x2d8] sm:$0xff]  ;;  %v1029_v49 = vld [vmem:[#allocation8 + $0x2e0] sm:$0xff] }
 0x200   :  { %v1114_v53 = vadd.f32 %v1018_v47, %v918_v50  ;;  %v1115_v54 = vadd.f32 %v1019_v51, %v662_v52 }
 0x202   :  { %1210 = vst [vmem:[#allocation10 + $0x288] sm:$0xff] %v1114_v53 }
 0x203   :  { %1211 = vst [vmem:[#allocation10 + $0x290] sm:$0xff] %v1115_v54  ;;  %v790_v55 = vpop.f32.mrf.mxu2  ;;  %v535_v58 = vpop.f32.mrf.mxu0 }
 0x204   :  { %v791_v56 = vadd.f32 %v790_v55, %v1598_v29  ;;  %v919_v57 = vpop.f32.mrf.mxu3  ;;  %v536_v60 = vadd.f32 %v535_v58, %v1595_v19  ;;  %v664_v61 = vpop.f32.mrf.mxu1 }
 0x206   :  { %v920_v62 = vadd.f32 %v919_v57, %v791_v56  ;;  %v665_v0 = vadd.f32 %v664_v61, %v536_v60  ;;  %v1030_v57 = vld [vmem:[#allocation8 + $0x2e8] sm:$0xff]  ;;  %v1031_v61 = vld [vmem:[#allocation8 + $0x2f0] sm:$0xff] }
 0x208   :  { %v1116_v1 = vadd.f32 %v1020_v59, %v920_v62  ;;  %v1117_v2 = vadd.f32 %v1021_v63, %v665_v0 }
 0x20a   :  { %1212 = vst [vmem:[#allocation10 + $0x298] sm:$0xff] %v1116_v1 }
 0x20b   :  { %1213 = vst [vmem:[#allocation10 + $0x2a0] sm:$0xff] %v1117_v2  ;;  %v793_v3 = vpop.f32.mrf.mxu2  ;;  %v537_v6 = vpop.f32.mrf.mxu0 }
 0x20c   :  { %v794_v4 = vadd.f32 %v793_v3, %v1598_v29  ;;  %v922_v5 = vpop.f32.mrf.mxu3  ;;  %v538_v8 = vadd.f32 %v537_v6, %v1595_v19  ;;  %v666_v9 = vpop.f32.mrf.mxu1 }
 0x20e   :  { %v923_v10 = vadd.f32 %v922_v5, %v794_v4  ;;  %v667_v12 = vadd.f32 %v666_v9, %v538_v8  ;;  %v1032_v4 = vld [vmem:[#allocation8 + $0x2f8] sm:$0xff] }
 0x210   :  { %v1118_v13 = vadd.f32 %v1022_v7, %v923_v10  ;;  %v1119_v14 = vadd.f32 %v1023_v11, %v667_v12 }
 0x212   :  { %1214 = vst [vmem:[#allocation10 + $0x2a8] sm:$0xff] %v1118_v13 }
 0x213   :  { %1215 = vst [vmem:[#allocation10 + $0x2b0] sm:$0xff] %v1119_v14  ;;  %v795_v15 = vpop.f32.mrf.mxu2  ;;  %v540_v18 = vpop.f32.mrf.mxu0 }
 0x214   :  { %v796_v16 = vadd.f32 %v795_v15, %v1598_v29  ;;  %v924_v17 = vpop.f32.mrf.mxu3  ;;  %v541_v21 = vadd.f32 %v540_v18, %v1595_v19  ;;  %v669_v22 = vpop.f32.mrf.mxu1 }
 0x216   :  { %v925_v23 = vadd.f32 %v924_v17, %v796_v16  ;;  %v670_v25 = vadd.f32 %v669_v22, %v541_v21 }
 0x218   :  { %v1120_v26 = vadd.f32 %v1024_v20, %v925_v23  ;;  %v1121_v27 = vadd.f32 %v1025_v24, %v670_v25 }
 0x21a   :  { %1216 = vst [vmem:[#allocation10 + $0x2b8] sm:$0xff] %v1120_v26 }
 0x21b   :  { %1217 = vst [vmem:[#allocation10 + $0x2c0] sm:$0xff] %v1121_v27  ;;  %v798_v28 = vpop.f32.mrf.mxu2  ;;  %v542_v32 = vpop.f32.mrf.mxu0 }
 0x21c   :  { %v799_v30 = vadd.f32 %v798_v28, %v1598_v29  ;;  %v927_v31 = vpop.f32.mrf.mxu3  ;;  %v543_v34 = vadd.f32 %v542_v32, %v1595_v19  ;;  %v671_v35 = vpop.f32.mrf.mxu1 }
 0x21e   :  { %v928_v36 = vadd.f32 %v927_v31, %v799_v30  ;;  %v672_v38 = vadd.f32 %v671_v35, %v543_v34 }
 0x220   :  { %v1122_v39 = vadd.f32 %v1026_v33, %v928_v36  ;;  %v1123_v40 = vadd.f32 %v1027_v37, %v672_v38 }
 0x222   :  { %1218 = vst [vmem:[#allocation10 + $0x2c8] sm:$0xff] %v1122_v39 }
 0x223   :  { %1219 = vst [vmem:[#allocation10 + $0x2d0] sm:$0xff] %v1123_v40  ;;  %v800_v41 = vpop.f32.mrf.mxu2  ;;  %v545_v44 = vpop.f32.mrf.mxu0 }
 0x224   :  { %v801_v42 = vadd.f32 %v800_v41, %v1598_v29  ;;  %v929_v43 = vpop.f32.mrf.mxu3  ;;  %v546_v46 = vadd.f32 %v545_v44, %v1595_v19  ;;  %v674_v47 = vpop.f32.mrf.mxu1 }
 0x226   :  { %v930_v48 = vadd.f32 %v929_v43, %v801_v42  ;;  %v675_v50 = vadd.f32 %v674_v47, %v546_v46 }
 0x228   :  { %v1124_v51 = vadd.f32 %v1028_v45, %v930_v48  ;;  %v1125_v52 = vadd.f32 %v1029_v49, %v675_v50 }
 0x22a   :  { %1220 = vst [vmem:[#allocation10 + $0x2d8] sm:$0xff] %v1124_v51 }
 0x22b   :  { %1221 = vst [vmem:[#allocation10 + $0x2e0] sm:$0xff] %v1125_v52  ;;  %v803_v53 = vpop.f32.mrf.mxu2  ;;  %v547_v56 = vpop.f32.mrf.mxu0 }
 0x22c   :  { %v804_v54 = vadd.f32 %v803_v53, %v1598_v29  ;;  %v932_v55 = vpop.f32.mrf.mxu3  ;;  %v548_v58 = vadd.f32 %v547_v56, %v1595_v19  ;;  %v676_v60 = vpop.f32.mrf.mxu1 }
 0x22e   :  { %v933_v59 = vadd.f32 %v932_v55, %v804_v54  ;;  %v677_v62 = vadd.f32 %v676_v60, %v548_v58 }
 0x230   :  { %v1126_v63 = vadd.f32 %v1030_v57, %v933_v59  ;;  %v1127_v0 = vadd.f32 %v1031_v61, %v677_v62 }
 0x232   :  { %1222 = vst [vmem:[#allocation10 + $0x2e8] sm:$0xff] %v1126_v63 }
 0x233   :  { %1223 = vst [vmem:[#allocation10 + $0x2f0] sm:$0xff] %v1127_v0  ;;  %v805_v1 = vpop.f32.mrf.mxu2 }
 0x234   :  { %v806_v2 = vadd.f32 %v805_v1, %v1598_v29  ;;  %v934_v3 = vpop.f32.mrf.mxu3 }
 0x236   :  { %v935_v19 = vadd.f32 %v934_v3, %v806_v2 }
 0x238   :  { %v1128_v5 = vadd.f32 %v1032_v4, %v935_v19 }
 0x23a   :  { %1224 = vst [vmem:[#allocation10 + $0x2f8] sm:$0xff] %v1128_v5 }
 0x23b   :  { %1237 = dma.vmem_to_hbm [thread:$0]  %s1230_s3, 12288, %s1232_s13, [#allocation4], %s1547_s27, %s1547_s27, %s1548_s28  }
 0x23c   :  { %1541 = dma.done.wait [#allocation4], 12288  }
 0x23d   :  { %1542 = vsyncadd [#allocation4], 4294955008 }
 0x23e   :  { %1242 = vsyncpa [#allocation3], 1 }
 0x23f   :  { %1243 = vsyncpa [#allocation6], 1 }
 0x240   :  { %1244 = vsyncpa [#allocation9], 1 }
 0x241   :  { %1245 = vsyncpa [#allocation4], 1 }

</bundles_post_ra>
